<compile_context>
chip_gen: v5e
topology: v5e:2x2
jax: 0.10.0
libtpu: 0.0.40
codegen_flags: <defaults>
</compile_context>

<pallas_src>
import functools

import jax
import jax.numpy as jnp
from jax import lax
from jax.experimental import pallas as pl
from jax.experimental.pallas import tpu as pltpu

LN_EPS = 1e-5   # nn.LayerNorm default


def mha_kernel(q_ref, k_ref, v_ref, mask_ref,
               wq_ref, bq_ref, wk_ref, bk_ref, wv_ref, bv_ref,
               wo_ref, bo_ref, g_ref, bt_ref,
               o_ref, attn_ref,
               kproj_ref, vproj_ref,
               *, n_head, d_k, d_v, inv_temp):
    # q_ref:     (TQ, D)       query tile (also the residual)
    # k_ref:     (LK, D)       full keys for this batch row
    # v_ref:     (LK, D)       full values for this batch row
    # mask_ref:  (TQ, LK) i8   nonzero => masked (torch masked_fill semantics)
    # wq/wk:     (D, H*dk)  wv: (D, H*dv)  wo: (H*dv, D)  (pre-transposed nn.Linear)
    # o_ref:     (TQ, D)       attn_ref: (H, TQ, LK)
    # kproj_ref: (LK, H*dk) VMEM scratch, persists across q tiles of one batch row
    # vproj_ref: (LK, H*dv) VMEM scratch, persists across q tiles of one batch row

    # --- K/V projections hoisted: only on the first q-tile of this batch row ---
    @pl.when(pl.program_id(1) == 0)
    def _():
        x_k = k_ref[...].astype(jnp.float32)
        x_v = v_ref[...].astype(jnp.float32)
        kproj_ref[...] = jnp.dot(x_k, wk_ref[...],
                                 preferred_element_type=jnp.float32) + bk_ref[...]
        vproj_ref[...] = jnp.dot(x_v, wv_ref[...],
                                 preferred_element_type=jnp.float32) + bv_ref[...]

    x_q = q_ref[...].astype(jnp.float32)
    Q = jnp.dot(x_q, wq_ref[...], preferred_element_type=jnp.float32) + bq_ref[...]
    K = kproj_ref[...]                                               # (LK, H*dk)
    V = vproj_ref[...]                                               # (LK, H*dv)

    masked = mask_ref[...] != 0                                      # (TQ, LK) bool

    # --- per-head scaled dot-product attention (static unroll; n_head is small) ---
    ctx_parts = []
    for h in range(n_head):
        qh = Q[:, h * d_k:(h + 1) * d_k]                             # (TQ, dk)
        kh = K[:, h * d_k:(h + 1) * d_k]                             # (LK, dk)
        vh = V[:, h * d_v:(h + 1) * d_v]                             # (LK, dv)
        # q @ k^T without materializing a transpose (contract dim 1 of both)
        s = lax.dot_general(qh, kh, (((1,), (1,)), ((), ())),
                            preferred_element_type=jnp.float32) * inv_temp
        s = jnp.where(masked, -jnp.inf, s)
        m = jnp.max(s, axis=-1, keepdims=True)
        p = jnp.exp(s - m)
        l = jnp.sum(p, axis=-1, keepdims=True)
        inv_l = pl.reciprocal(l, approx=True)                        # EUP slot, no divide
        a = p * inv_l                                                # softmax
        attn_ref[h] = a.astype(attn_ref.dtype)
        ctx_parts.append(jnp.dot(a, vh, preferred_element_type=jnp.float32))

    # --- fc projection (single big-K dot), dropout=identity, residual, LayerNorm ---
    ctx = jnp.concatenate(ctx_parts, axis=-1)                        # (TQ, H*dv) lane-dense
    y = jnp.dot(ctx, wo_ref[...], preferred_element_type=jnp.float32) + bo_ref[...]
    z = y + x_q
    mean = jnp.mean(z, axis=-1, keepdims=True)
    zc = z - mean
    var = jnp.mean(zc * zc, axis=-1, keepdims=True)                  # two-pass (stable)
    norm = zc * lax.rsqrt(var + LN_EPS)
    o_ref[...] = (norm * g_ref[...] + bt_ref[...]).astype(o_ref.dtype)


def multi_head_attention(q, k, v, mask, wq, bq, wk, bk, wv, bv, wo, bo,
                         gamma, beta, *, n_head, d_k, d_v,
                         attn_dtype=jnp.float32):
    """q,k,v: (B, L, d_model) f32; mask: (B, Lq, Lk), nonzero = masked (any numeric dtype,
    int8 recommended).  Returns (out (B, Lq, d_model), attn (n_head*B, Lq, Lk))."""
    B, Lq, D = q.shape
    Lk = k.shape[1]

    # --- generation-aware VMEM budget & query-tile size ---
    try:
        vmem_cap = int(pltpu.get_tpu_info().vmem_capacity_bytes)
    except Exception:                                                # pragma: no cover
        vmem_cap = 128 * 1024 * 1024
    # Leave ~16 MiB headroom for compiler-internal scratch; never request the full chip.
    vmem_limit = max(32 * 1024 * 1024,
                     min(vmem_cap - 16 * 1024 * 1024, 112 * 1024 * 1024))
    max_tq = 128 if vmem_cap <= 64 * 1024 * 1024 else 256            # v7x vs v5e/v6e
    if Lq % max_tq == 0:
        TQ = max_tq
    elif Lq % 128 == 0:
        TQ = 128
    else:
        TQ = Lq
    n_qt = Lq // TQ

    rep = lambda shape: pl.BlockSpec(shape, lambda b, i: (0,) * len(shape))

    # Cost estimate for the hoisted schedule (K/V projected once per batch row).
    flops = 2 * B * (Lq * D * n_head * d_k                 # Q projection
                     + Lk * D * n_head * d_k               # K projection (once per row)
                     + Lk * D * n_head * d_v               # V projection (once per row)
                     + n_head * Lq * Lk * (d_k + d_v)      # scores + attn@V
                     + Lq * n_head * d_v * D)              # fc
    nbytes = lambda x: x.size * x.dtype.itemsize
    bytes_accessed = (nbytes(q) + nbytes(k) + nbytes(v) + nbytes(mask)
                      + nbytes(wq) + nbytes(bq) + nbytes(wk) + nbytes(bk)
                      + nbytes(wv) + nbytes(bv) + nbytes(wo) + nbytes(bo)
                      + nbytes(gamma) + nbytes(beta)
                      + B * Lq * D * 4
                      + B * n_head * Lq * Lk * jnp.dtype(attn_dtype).itemsize)

    kernel = functools.partial(mha_kernel, n_head=n_head, d_k=d_k, d_v=d_v,
                               inv_temp=1.0 / (float(d_k) ** 0.5))

    out, attn = pl.pallas_call(
        kernel,
        out_shape=(jax.ShapeDtypeStruct((B, Lq, D), jnp.float32),
                   # head-major so the wrapper reshape is free (no transpose pass)
                   jax.ShapeDtypeStruct((n_head, B, Lq, Lk), attn_dtype)),
        grid_spec=pltpu.PrefetchScalarGridSpec(
            num_scalar_prefetch=0,
            grid=(B, n_qt),
            in_specs=[
                pl.BlockSpec((None, TQ, D), lambda b, i: (b, i, 0)),    # q (residual)
                pl.BlockSpec((None, Lk, D), lambda b, i: (b, 0, 0)),    # k (per-row resident)
                pl.BlockSpec((None, Lk, D), lambda b, i: (b, 0, 0)),    # v (per-row resident)
                pl.BlockSpec((None, TQ, Lk), lambda b, i: (b, i, 0)),   # mask (int8)
                rep((D, n_head * d_k)), rep((1, n_head * d_k)),         # wq, bq
                rep((D, n_head * d_k)), rep((1, n_head * d_k)),         # wk, bk
                rep((D, n_head * d_v)), rep((1, n_head * d_v)),         # wv, bv
                rep((n_head * d_v, D)), rep((1, D)),                    # wo, bo
                rep((1, D)), rep((1, D)),                               # gamma, beta
            ],
            out_specs=[
                pl.BlockSpec((None, TQ, D), lambda b, i: (b, i, 0)),
                pl.BlockSpec((n_head, None, TQ, Lk), lambda b, i: (0, b, i, 0)),
            ],
            scratch_shapes=[
                pltpu.VMEM((Lk, n_head * d_k), jnp.float32),   # hoisted K projection
                pltpu.VMEM((Lk, n_head * d_v), jnp.float32),   # hoisted V projection
            ],
        ),
        compiler_params=pltpu.CompilerParams(
            # K/V scratch carries across the inner q-tile axis -> "arbitrary";
            # batch stays "parallel" for megacore / v7x 2-TC sharding.
            dimension_semantics=("parallel", "arbitrary"),
            vmem_limit_bytes=int(vmem_limit)),
        cost_estimate=pl.CostEstimate(flops=int(flops),
                                      transcendentals=int(B * n_head * Lq * Lk),
                                      bytes_accessed=int(bytes_accessed)),
    )(q, k, v, mask, wq, bq, wk, bk, wv, bv, wo, bo, gamma, beta)

    # (H, B, Lq, Lk) -> (H*B, Lq, Lk): pure reshape (head-major already), no transpose.
    attn = attn.reshape(n_head * B, Lq, Lk)
    return out, attn


def ref_mha(q, k, v, mask, wq, bq, wk, bk, wv, bv, wo, bo, gamma, beta,
            *, n_head, d_k, d_v):
    """Pure-JAX reference mirroring the PyTorch forward semantics (eval mode)."""
    B, Lq, D = q.shape
    Lk = k.shape[1]
    residual = q
    Q = (q @ wq + bq).reshape(B, Lq, n_head, d_k)
    K = (k @ wk + bk).reshape(B, Lk, n_head, d_k)
    V = (v @ wv + bv).reshape(B, Lk, n_head, d_v)
    Q = jnp.transpose(Q, (2, 0, 1, 3)).reshape(-1, Lq, d_k)
    K = jnp.transpose(K, (2, 0, 1, 3)).reshape(-1, Lk, d_k)
    V = jnp.transpose(V, (2, 0, 1, 3)).reshape(-1, Lk, d_v)
    maskr = jnp.tile(mask, (n_head, 1, 1))
    attn = jnp.einsum('bqd,bkd->bqk', Q, K) / (float(d_k) ** 0.5)
    attn = jnp.where(maskr != 0, -jnp.inf, attn)
    attn = jax.nn.softmax(attn, axis=-1)
    out = jnp.einsum('bqk,bkd->bqd', attn, V)
    out = out.reshape(n_head, B, Lq, d_v)
    out = jnp.transpose(out, (1, 2, 0, 3)).reshape(B, Lq, -1)
    out = out @ wo + bo
    z = out + residual
    mean = z.mean(-1, keepdims=True)
    var = ((z - mean) ** 2).mean(-1, keepdims=True)
    out = (z - mean) / jnp.sqrt(var + LN_EPS) * gamma + beta
    return out, attn


if __name__ == "__main__":
    # small, lane-friendly shapes
    B, L, d_model = 2, 16, 128
    n_head, d_k, d_v = 4, 32, 32

    key = jax.random.PRNGKey(0)
    ks = jax.random.split(key, 13)
    q = jax.random.normal(ks[0], (B, L, d_model), jnp.float32)
    k = jax.random.normal(ks[1], (B, L, d_model), jnp.float32)
    v = jax.random.normal(ks[2], (B, L, d_model), jnp.float32)

    scale = 0.05
    # nn.Linear weights are (out, in) in torch; stored pre-transposed as (in, out) here.
    wq = jax.random.normal(ks[3], (d_model, n_head * d_k), jnp.float32) * scale
    bq = jax.random.normal(ks[4], (1, n_head * d_k), jnp.float32) * scale
    wk = jax.random.normal(ks[5], (d_model, n_head * d_k), jnp.float32) * scale
    bk = jax.random.normal(ks[6], (1, n_head * d_k), jnp.float32) * scale
    wv = jax.random.normal(ks[7], (d_model, n_head * d_v), jnp.float32) * scale
    bv = jax.random.normal(ks[8], (1, n_head * d_v), jnp.float32) * scale
    wo = jax.random.normal(ks[9], (n_head * d_v, d_model), jnp.float32) * scale
    bo = jax.random.normal(ks[10], (1, d_model), jnp.float32) * scale
    gamma = 1.0 + 0.1 * jax.random.normal(ks[11], (1, d_model), jnp.float32)
    beta = 0.1 * jax.random.normal(ks[12], (1, d_model), jnp.float32)

    # key-padding mask, int8: mask[b, :, j] = 1 if key j is padded (every query row keeps
    # at least one unmasked key, matching torch masked_fill(-inf) semantics).
    valid = jnp.array([L, L - 5], jnp.int32)
    mask = (jnp.arange(L)[None, None, :] >= valid[:, None, None]).astype(jnp.int8)
    mask = jnp.broadcast_to(mask, (B, L, L))

    out, attn = multi_head_attention(q, k, v, mask, wq, bq, wk, bk, wv, bv, wo, bo,
                                     gamma, beta, n_head=n_head, d_k=d_k, d_v=d_v)
    out, attn = jax.block_until_ready((out, attn))

    ref_out, ref_attn = ref_mha(q, k, v, mask, wq, bq, wk, bk, wv, bv, wo, bo,
                                gamma, beta, n_head=n_head, d_k=d_k, d_v=d_v)

    assert out.shape == (B, L, d_model)
    assert attn.shape == (n_head * B, L, L)
    # Tolerance slightly relaxed vs exact softmax because the kernel normalizes with the
    # EUP approximate reciprocal (pl.reciprocal(..., approx=True)).
    assert jnp.allclose(out, ref_out, atol=5e-3, rtol=5e-3), \
        f"out max abs err {float(jnp.max(jnp.abs(out - ref_out)))}"
    assert jnp.allclose(attn, ref_attn, atol=5e-3, rtol=5e-3), \
        f"attn max abs err {float(jnp.max(jnp.abs(attn - ref_attn)))}"
    print("KERNEL_OK")
</pallas_src>

<mosaic_0001>
module attributes {stable_mosaic.version = 11 : i64} {
  func.func @mha_kernel(%arg0: i32, %arg1: i32, %arg2: memref<1x16x128xf32, #tpu.memory_space<vmem>>, %arg3: memref<1x16x128xf32, #tpu.memory_space<vmem>>, %arg4: memref<1x16x128xf32, #tpu.memory_space<vmem>>, %arg5: memref<1x16x16xi8, #tpu.memory_space<vmem>>, %arg6: memref<128x128xf32, #tpu.memory_space<vmem>>, %arg7: memref<1x128xf32, #tpu.memory_space<vmem>>, %arg8: memref<128x128xf32, #tpu.memory_space<vmem>>, %arg9: memref<1x128xf32, #tpu.memory_space<vmem>>, %arg10: memref<128x128xf32, #tpu.memory_space<vmem>>, %arg11: memref<1x128xf32, #tpu.memory_space<vmem>>, %arg12: memref<128x128xf32, #tpu.memory_space<vmem>>, %arg13: memref<1x128xf32, #tpu.memory_space<vmem>>, %arg14: memref<1x128xf32, #tpu.memory_space<vmem>>, %arg15: memref<1x128xf32, #tpu.memory_space<vmem>>, %arg16: memref<1x16x128xf32, #tpu.memory_space<vmem>>, %arg17: memref<4x1x16x16xf32, #tpu.memory_space<vmem>>, %arg18: memref<16x128xf32, #tpu.memory_space<vmem>>, %arg19: memref<16x128xf32, #tpu.memory_space<vmem>>) attributes {dimension_semantics = [#tpu.dimension_semantics<parallel>, #tpu.dimension_semantics<arbitrary>], iteration_bounds = array<i64: 2, 1>, scalar_prefetch = 0 : i64, scratch_operands = 2 : i64, tpu.core_type = #tpu.core_type<tc>, window_params = [{transform_indices = @transform_0, window_bounds = array<i64: 1, 16, 128>}, {transform_indices = @transform_1, window_bounds = array<i64: 1, 16, 128>}, {transform_indices = @transform_2, window_bounds = array<i64: 1, 16, 128>}, {transform_indices = @transform_3, window_bounds = array<i64: 1, 16, 16>}, {pipeline_mode = #tpu.pipeline_mode<synchronous>, transform_indices = @transform_4, window_bounds = array<i64: 128, 128>}, {pipeline_mode = #tpu.pipeline_mode<synchronous>, transform_indices = @transform_5, window_bounds = array<i64: 1, 128>}, {pipeline_mode = #tpu.pipeline_mode<synchronous>, transform_indices = @transform_6, window_bounds = array<i64: 128, 128>}, {pipeline_mode = #tpu.pipeline_mode<synchronous>, transform_indices = @transform_7, window_bounds = array<i64: 1, 128>}, {pipeline_mode = #tpu.pipeline_mode<synchronous>, transform_indices = @transform_8, window_bounds = array<i64: 128, 128>}, {pipeline_mode = #tpu.pipeline_mode<synchronous>, transform_indices = @transform_9, window_bounds = array<i64: 1, 128>}, {pipeline_mode = #tpu.pipeline_mode<synchronous>, transform_indices = @transform_10, window_bounds = array<i64: 128, 128>}, {pipeline_mode = #tpu.pipeline_mode<synchronous>, transform_indices = @transform_11, window_bounds = array<i64: 1, 128>}, {pipeline_mode = #tpu.pipeline_mode<synchronous>, transform_indices = @transform_12, window_bounds = array<i64: 1, 128>}, {pipeline_mode = #tpu.pipeline_mode<synchronous>, transform_indices = @transform_13, window_bounds = array<i64: 1, 128>}, {transform_indices = @transform_14, window_bounds = array<i64: 1, 16, 128>}, {transform_indices = @transform_15, window_bounds = array<i64: 4, 1, 16, 16>}]} {
    %c0_i32 = arith.constant 0 : i32
    %0 = arith.cmpi eq, %arg1, %c0_i32 : i32
    %1 = arith.extui %0 : i1 to i32
    %c0_i32_0 = arith.constant 0 : i32
    %2 = arith.cmpi ne, %1, %c0_i32_0 : i32
    scf.if %2 {
      %c0_68 = arith.constant 0 : index
      %c0_69 = arith.constant 0 : index
      %c0_70 = arith.constant 0 : index
      %136 = vector.load %arg3[%c0_68, %c0_69, %c0_70] : memref<1x16x128xf32, #tpu.memory_space<vmem>>, vector<1x16x128xf32>
      %137 = vector.shape_cast %136 : vector<1x16x128xf32> to vector<16x128xf32>
      %c0_71 = arith.constant 0 : index
      %c0_72 = arith.constant 0 : index
      %c0_73 = arith.constant 0 : index
      %138 = vector.load %arg4[%c0_71, %c0_72, %c0_73] : memref<1x16x128xf32, #tpu.memory_space<vmem>>, vector<1x16x128xf32>
      %139 = vector.shape_cast %138 : vector<1x16x128xf32> to vector<16x128xf32>
      %c0_74 = arith.constant 0 : index
      %c0_75 = arith.constant 0 : index
      %140 = vector.load %arg8[%c0_74, %c0_75] : memref<128x128xf32, #tpu.memory_space<vmem>>, vector<128x128xf32>
      %cst_76 = arith.constant dense<0.000000e+00> : vector<16x128xf32>
      %141 = tpu.matmul %137, %140, %cst_76 {dimension_numbers = #tpu.dot_dimension_numbers<[1], [0], [0], [1], [0, 0, 1, 1], [], []>} : vector<16x128xf32>, vector<128x128xf32>, vector<16x128xf32> -> vector<16x128xf32>
      %c0_77 = arith.constant 0 : index
      %c0_78 = arith.constant 0 : index
      %142 = vector.load %arg9[%c0_77, %c0_78] : memref<1x128xf32, #tpu.memory_space<vmem>>, vector<1x128xf32>
      %143 = vector.broadcast %142 : vector<1x128xf32> to vector<16x128xf32>
      %144 = arith.addf %141, %143 : vector<16x128xf32>
      %c0_79 = arith.constant 0 : index
      %c0_80 = arith.constant 0 : index
      %145 = vector.load %arg18[%c0_79, %c0_80] : memref<16x128xf32, #tpu.memory_space<vmem>>, vector<16x128xf32>
      tpu.vector_store %arg18[%c0_79, %c0_80], %144 {strides = array<i32>} : memref<16x128xf32, #tpu.memory_space<vmem>>, vector<16x128xf32>,
      %c0_81 = arith.constant 0 : index
      %c0_82 = arith.constant 0 : index
      %146 = vector.load %arg10[%c0_81, %c0_82] : memref<128x128xf32, #tpu.memory_space<vmem>>, vector<128x128xf32>
      %cst_83 = arith.constant dense<0.000000e+00> : vector<16x128xf32>
      %147 = tpu.matmul %139, %146, %cst_83 {dimension_numbers = #tpu.dot_dimension_numbers<[1], [0], [0], [1], [0, 0, 1, 1], [], []>} : vector<16x128xf32>, vector<128x128xf32>, vector<16x128xf32> -> vector<16x128xf32>
      %c0_84 = arith.constant 0 : index
      %c0_85 = arith.constant 0 : index
      %148 = vector.load %arg11[%c0_84, %c0_85] : memref<1x128xf32, #tpu.memory_space<vmem>>, vector<1x128xf32>
      %149 = vector.broadcast %148 : vector<1x128xf32> to vector<16x128xf32>
      %150 = arith.addf %147, %149 : vector<16x128xf32>
      %c0_86 = arith.constant 0 : index
      %c0_87 = arith.constant 0 : index
      %151 = vector.load %arg19[%c0_86, %c0_87] : memref<16x128xf32, #tpu.memory_space<vmem>>, vector<16x128xf32>
      tpu.vector_store %arg19[%c0_86, %c0_87], %150 {strides = array<i32>} : memref<16x128xf32, #tpu.memory_space<vmem>>, vector<16x128xf32>,
    } else {
    }
    %c0 = arith.constant 0 : index
    %c0_1 = arith.constant 0 : index
    %c0_2 = arith.constant 0 : index
    %3 = vector.load %arg2[%c0, %c0_1, %c0_2] : memref<1x16x128xf32, #tpu.memory_space<vmem>>, vector<1x16x128xf32>
    %4 = vector.shape_cast %3 : vector<1x16x128xf32> to vector<16x128xf32>
    %c0_3 = arith.constant 0 : index
    %c0_4 = arith.constant 0 : index
    %5 = vector.load %arg6[%c0_3, %c0_4] : memref<128x128xf32, #tpu.memory_space<vmem>>, vector<128x128xf32>
    %cst = arith.constant dense<0.000000e+00> : vector<16x128xf32>
    %6 = tpu.matmul %4, %5, %cst {dimension_numbers = #tpu.dot_dimension_numbers<[1], [0], [0], [1], [0, 0, 1, 1], [], []>} : vector<16x128xf32>, vector<128x128xf32>, vector<16x128xf32> -> vector<16x128xf32>
    %c0_5 = arith.constant 0 : index
    %c0_6 = arith.constant 0 : index
    %7 = vector.load %arg7[%c0_5, %c0_6] : memref<1x128xf32, #tpu.memory_space<vmem>>, vector<1x128xf32>
    %8 = vector.broadcast %7 : vector<1x128xf32> to vector<16x128xf32>
    %9 = arith.addf %6, %8 : vector<16x128xf32>
    %c0_7 = arith.constant 0 : index
    %c0_8 = arith.constant 0 : index
    %10 = vector.load %arg18[%c0_7, %c0_8] : memref<16x128xf32, #tpu.memory_space<vmem>>, vector<16x128xf32>
    %c0_9 = arith.constant 0 : index
    %c0_10 = arith.constant 0 : index
    %11 = vector.load %arg19[%c0_9, %c0_10] : memref<16x128xf32, #tpu.memory_space<vmem>>, vector<16x128xf32>
    %c0_11 = arith.constant 0 : index
    %c0_12 = arith.constant 0 : index
    %c0_13 = arith.constant 0 : index
    %12 = vector.load %arg5[%c0_11, %c0_12, %c0_13] : memref<1x16x16xi8, #tpu.memory_space<vmem>>, vector<1x16x16xi8>
    %13 = vector.shape_cast %12 : vector<1x16x16xi8> to vector<16x16xi8>
    %c0_i8 = arith.constant 0 : i8
    %14 = vector.broadcast %c0_i8 : i8 to vector<16x16xi8>
    %15 = arith.cmpi ne, %13, %14 : vector<16x16xi8>
    %16 = vector.extract_strided_slice %9 {offsets = [0, 0], sizes = [16, 32], strides = [1, 1]} : vector<16x128xf32> to vector<16x32xf32>
    %17 = vector.extract_strided_slice %10 {offsets = [0, 0], sizes = [16, 32], strides = [1, 1]} : vector<16x128xf32> to vector<16x32xf32>
    %18 = vector.extract_strided_slice %11 {offsets = [0, 0], sizes = [16, 32], strides = [1, 1]} : vector<16x128xf32> to vector<16x32xf32>
    %cst_14 = arith.constant dense<0.000000e+00> : vector<16x16xf32>
    %19 = tpu.matmul %16, %17, %cst_14 {dimension_numbers = #tpu.dot_dimension_numbers<[1], [1], [0], [0], [0, 0, 1, 0], [], []>} : vector<16x32xf32>, vector<16x32xf32>, vector<16x16xf32> -> vector<16x16xf32>
    %cst_15 = arith.constant 0.176776692 : f32
    %20 = vector.broadcast %cst_15 : f32 to vector<16x16xf32>
    %21 = arith.mulf %19, %20 : vector<16x16xf32>
    %cst_16 = arith.constant 0xFF800000 : f32
    %22 = vector.broadcast %cst_16 : f32 to vector<16x16xf32>
    %23 = arith.select %15, %22, %21 : vector<16x16xi1>, vector<16x16xf32>
    %cst_17 = arith.constant dense<0xFF800000> : vector<16xf32>
    %24 = vector.multi_reduction <maximumf>, %23, %cst_17 [1] : vector<16x16xf32> to vector<16xf32>
    %25 = vector.shape_cast %24 : vector<16xf32> to vector<16x1xf32>
    %26 = vector.broadcast %25 : vector<16x1xf32> to vector<16x16xf32>
    %27 = arith.subf %23, %26 : vector<16x16xf32>
    %28 = math.exp %27 : vector<16x16xf32>
    %cst_18 = arith.constant dense<0.000000e+00> : vector<16xf32>
    %29 = vector.multi_reduction <add>, %28, %cst_18 [1] : vector<16x16xf32> to vector<16xf32>
    %30 = vector.shape_cast %29 : vector<16xf32> to vector<16x1xf32>
    %31 = tpu.reciprocal %30 {approx = true} : vector<16x1xf32> -> vector<16x1xf32>
    %32 = vector.broadcast %31 : vector<16x1xf32> to vector<16x16xf32>
    %33 = arith.mulf %28, %32 : vector<16x16xf32>
    %c0_19 = arith.constant 0 : index
    %c0_20 = arith.constant 0 : index
    %c0_21 = arith.constant 0 : index
    %c0_22 = arith.constant 0 : index
    %34 = vector.load %arg17[%c0_19, %c0_20, %c0_21, %c0_22] : memref<4x1x16x16xf32, #tpu.memory_space<vmem>>, vector<1x1x16x16xf32>
    %35 = vector.shape_cast %34 : vector<1x1x16x16xf32> to vector<16x16xf32>
    %36 = vector.shape_cast %33 : vector<16x16xf32> to vector<1x1x16x16xf32>
    tpu.vector_store %arg17[%c0_19, %c0_20, %c0_21, %c0_22], %36 {strides = array<i32>} : memref<4x1x16x16xf32, #tpu.memory_space<vmem>>, vector<1x1x16x16xf32>,
    %cst_23 = arith.constant dense<0.000000e+00> : vector<16x32xf32>
    %37 = tpu.matmul %33, %18, %cst_23 {dimension_numbers = #tpu.dot_dimension_numbers<[1], [0], [0], [1], [0, 0, 1, 1], [], []>} : vector<16x16xf32>, vector<16x32xf32>, vector<16x32xf32> -> vector<16x32xf32>
    %38 = vector.extract_strided_slice %9 {offsets = [0, 32], sizes = [16, 32], strides = [1, 1]} : vector<16x128xf32> to vector<16x32xf32>
    %39 = vector.extract_strided_slice %10 {offsets = [0, 32], sizes = [16, 32], strides = [1, 1]} : vector<16x128xf32> to vector<16x32xf32>
    %40 = vector.extract_strided_slice %11 {offsets = [0, 32], sizes = [16, 32], strides = [1, 1]} : vector<16x128xf32> to vector<16x32xf32>
    %cst_24 = arith.constant dense<0.000000e+00> : vector<16x16xf32>
    %41 = tpu.matmul %38, %39, %cst_24 {dimension_numbers = #tpu.dot_dimension_numbers<[1], [1], [0], [0], [0, 0, 1, 0], [], []>} : vector<16x32xf32>, vector<16x32xf32>, vector<16x16xf32> -> vector<16x16xf32>
    %cst_25 = arith.constant 0.176776692 : f32
    %42 = vector.broadcast %cst_25 : f32 to vector<16x16xf32>
    %43 = arith.mulf %41, %42 : vector<16x16xf32>
    %cst_26 = arith.constant 0xFF800000 : f32
    %44 = vector.broadcast %cst_26 : f32 to vector<16x16xf32>
    %45 = arith.select %15, %44, %43 : vector<16x16xi1>, vector<16x16xf32>
    %cst_27 = arith.constant dense<0xFF800000> : vector<16xf32>
    %46 = vector.multi_reduction <maximumf>, %45, %cst_27 [1] : vector<16x16xf32> to vector<16xf32>
    %47 = vector.shape_cast %46 : vector<16xf32> to vector<16x1xf32>
    %48 = vector.broadcast %47 : vector<16x1xf32> to vector<16x16xf32>
    %49 = arith.subf %45, %48 : vector<16x16xf32>
    %50 = math.exp %49 : vector<16x16xf32>
    %cst_28 = arith.constant dense<0.000000e+00> : vector<16xf32>
    %51 = vector.multi_reduction <add>, %50, %cst_28 [1] : vector<16x16xf32> to vector<16xf32>
    %52 = vector.shape_cast %51 : vector<16xf32> to vector<16x1xf32>
    %53 = tpu.reciprocal %52 {approx = true} : vector<16x1xf32> -> vector<16x1xf32>
    %54 = vector.broadcast %53 : vector<16x1xf32> to vector<16x16xf32>
    %55 = arith.mulf %50, %54 : vector<16x16xf32>
    %c1 = arith.constant 1 : index
    %c0_29 = arith.constant 0 : index
    %c0_30 = arith.constant 0 : index
    %c0_31 = arith.constant 0 : index
    %56 = vector.load %arg17[%c1, %c0_29, %c0_30, %c0_31] : memref<4x1x16x16xf32, #tpu.memory_space<vmem>>, vector<1x1x16x16xf32>
    %57 = vector.shape_cast %56 : vector<1x1x16x16xf32> to vector<16x16xf32>
    %58 = vector.shape_cast %55 : vector<16x16xf32> to vector<1x1x16x16xf32>
    tpu.vector_store %arg17[%c1, %c0_29, %c0_30, %c0_31], %58 {strides = array<i32>} : memref<4x1x16x16xf32, #tpu.memory_space<vmem>>, vector<1x1x16x16xf32>,
    %cst_32 = arith.constant dense<0.000000e+00> : vector<16x32xf32>
    %59 = tpu.matmul %55, %40, %cst_32 {dimension_numbers = #tpu.dot_dimension_numbers<[1], [0], [0], [1], [0, 0, 1, 1], [], []>} : vector<16x16xf32>, vector<16x32xf32>, vector<16x32xf32> -> vector<16x32xf32>
    %60 = vector.extract_strided_slice %9 {offsets = [0, 64], sizes = [16, 32], strides = [1, 1]} : vector<16x128xf32> to vector<16x32xf32>
    %61 = vector.extract_strided_slice %10 {offsets = [0, 64], sizes = [16, 32], strides = [1, 1]} : vector<16x128xf32> to vector<16x32xf32>
    %62 = vector.extract_strided_slice %11 {offsets = [0, 64], sizes = [16, 32], strides = [1, 1]} : vector<16x128xf32> to vector<16x32xf32>
    %cst_33 = arith.constant dense<0.000000e+00> : vector<16x16xf32>
    %63 = tpu.matmul %60, %61, %cst_33 {dimension_numbers = #tpu.dot_dimension_numbers<[1], [1], [0], [0], [0, 0, 1, 0], [], []>} : vector<16x32xf32>, vector<16x32xf32>, vector<16x16xf32> -> vector<16x16xf32>
    %cst_34 = arith.constant 0.176776692 : f32
    %64 = vector.broadcast %cst_34 : f32 to vector<16x16xf32>
    %65 = arith.mulf %63, %64 : vector<16x16xf32>
    %cst_35 = arith.constant 0xFF800000 : f32
    %66 = vector.broadcast %cst_35 : f32 to vector<16x16xf32>
    %67 = arith.select %15, %66, %65 : vector<16x16xi1>, vector<16x16xf32>
    %cst_36 = arith.constant dense<0xFF800000> : vector<16xf32>
    %68 = vector.multi_reduction <maximumf>, %67, %cst_36 [1] : vector<16x16xf32> to vector<16xf32>
    %69 = vector.shape_cast %68 : vector<16xf32> to vector<16x1xf32>
    %70 = vector.broadcast %69 : vector<16x1xf32> to vector<16x16xf32>
    %71 = arith.subf %67, %70 : vector<16x16xf32>
    %72 = math.exp %71 : vector<16x16xf32>
    %cst_37 = arith.constant dense<0.000000e+00> : vector<16xf32>
    %73 = vector.multi_reduction <add>, %72, %cst_37 [1] : vector<16x16xf32> to vector<16xf32>
    %74 = vector.shape_cast %73 : vector<16xf32> to vector<16x1xf32>
    %75 = tpu.reciprocal %74 {approx = true} : vector<16x1xf32> -> vector<16x1xf32>
    %76 = vector.broadcast %75 : vector<16x1xf32> to vector<16x16xf32>
    %77 = arith.mulf %72, %76 : vector<16x16xf32>
    %c2 = arith.constant 2 : index
    %c0_38 = arith.constant 0 : index
    %c0_39 = arith.constant 0 : index
    %c0_40 = arith.constant 0 : index
    %78 = vector.load %arg17[%c2, %c0_38, %c0_39, %c0_40] : memref<4x1x16x16xf32, #tpu.memory_space<vmem>>, vector<1x1x16x16xf32>
    %79 = vector.shape_cast %78 : vector<1x1x16x16xf32> to vector<16x16xf32>
    %80 = vector.shape_cast %77 : vector<16x16xf32> to vector<1x1x16x16xf32>
    tpu.vector_store %arg17[%c2, %c0_38, %c0_39, %c0_40], %80 {strides = array<i32>} : memref<4x1x16x16xf32, #tpu.memory_space<vmem>>, vector<1x1x16x16xf32>,
    %cst_41 = arith.constant dense<0.000000e+00> : vector<16x32xf32>
    %81 = tpu.matmul %77, %62, %cst_41 {dimension_numbers = #tpu.dot_dimension_numbers<[1], [0], [0], [1], [0, 0, 1, 1], [], []>} : vector<16x16xf32>, vector<16x32xf32>, vector<16x32xf32> -> vector<16x32xf32>
    %82 = vector.extract_strided_slice %9 {offsets = [0, 96], sizes = [16, 32], strides = [1, 1]} : vector<16x128xf32> to vector<16x32xf32>
    %83 = vector.extract_strided_slice %10 {offsets = [0, 96], sizes = [16, 32], strides = [1, 1]} : vector<16x128xf32> to vector<16x32xf32>
    %84 = vector.extract_strided_slice %11 {offsets = [0, 96], sizes = [16, 32], strides = [1, 1]} : vector<16x128xf32> to vector<16x32xf32>
    %cst_42 = arith.constant dense<0.000000e+00> : vector<16x16xf32>
    %85 = tpu.matmul %82, %83, %cst_42 {dimension_numbers = #tpu.dot_dimension_numbers<[1], [1], [0], [0], [0, 0, 1, 0], [], []>} : vector<16x32xf32>, vector<16x32xf32>, vector<16x16xf32> -> vector<16x16xf32>
    %cst_43 = arith.constant 0.176776692 : f32
    %86 = vector.broadcast %cst_43 : f32 to vector<16x16xf32>
    %87 = arith.mulf %85, %86 : vector<16x16xf32>
    %cst_44 = arith.constant 0xFF800000 : f32
    %88 = vector.broadcast %cst_44 : f32 to vector<16x16xf32>
    %89 = arith.select %15, %88, %87 : vector<16x16xi1>, vector<16x16xf32>
    %cst_45 = arith.constant dense<0xFF800000> : vector<16xf32>
    %90 = vector.multi_reduction <maximumf>, %89, %cst_45 [1] : vector<16x16xf32> to vector<16xf32>
    %91 = vector.shape_cast %90 : vector<16xf32> to vector<16x1xf32>
    %92 = vector.broadcast %91 : vector<16x1xf32> to vector<16x16xf32>
    %93 = arith.subf %89, %92 : vector<16x16xf32>
    %94 = math.exp %93 : vector<16x16xf32>
    %cst_46 = arith.constant dense<0.000000e+00> : vector<16xf32>
    %95 = vector.multi_reduction <add>, %94, %cst_46 [1] : vector<16x16xf32> to vector<16xf32>
    %96 = vector.shape_cast %95 : vector<16xf32> to vector<16x1xf32>
    %97 = tpu.reciprocal %96 {approx = true} : vector<16x1xf32> -> vector<16x1xf32>
    %98 = vector.broadcast %97 : vector<16x1xf32> to vector<16x16xf32>
    %99 = arith.mulf %94, %98 : vector<16x16xf32>
    %c3 = arith.constant 3 : index
    %c0_47 = arith.constant 0 : index
    %c0_48 = arith.constant 0 : index
    %c0_49 = arith.constant 0 : index
    %100 = vector.load %arg17[%c3, %c0_47, %c0_48, %c0_49] : memref<4x1x16x16xf32, #tpu.memory_space<vmem>>, vector<1x1x16x16xf32>
    %101 = vector.shape_cast %100 : vector<1x1x16x16xf32> to vector<16x16xf32>
    %102 = vector.shape_cast %99 : vector<16x16xf32> to vector<1x1x16x16xf32>
    tpu.vector_store %arg17[%c3, %c0_47, %c0_48, %c0_49], %102 {strides = array<i32>} : memref<4x1x16x16xf32, #tpu.memory_space<vmem>>, vector<1x1x16x16xf32>,
    %cst_50 = arith.constant dense<0.000000e+00> : vector<16x32xf32>
    %103 = tpu.matmul %99, %84, %cst_50 {dimension_numbers = #tpu.dot_dimension_numbers<[1], [0], [0], [1], [0, 0, 1, 1], [], []>} : vector<16x16xf32>, vector<16x32xf32>, vector<16x32xf32> -> vector<16x32xf32>
    %104 = tpu.concatenate %37, %59, %81, %103 in 1 : vector<16x32xf32>, vector<16x32xf32>, vector<16x32xf32>, vector<16x32xf32> -> vector<16x128xf32>
    %c0_51 = arith.constant 0 : index
    %c0_52 = arith.constant 0 : index
    %105 = vector.load %arg12[%c0_51, %c0_52] : memref<128x128xf32, #tpu.memory_space<vmem>>, vector<128x128xf32>
    %cst_53 = arith.constant dense<0.000000e+00> : vector<16x128xf32>
    %106 = tpu.matmul %104, %105, %cst_53 {dimension_numbers = #tpu.dot_dimension_numbers<[1], [0], [0], [1], [0, 0, 1, 1], [], []>} : vector<16x128xf32>, vector<128x128xf32>, vector<16x128xf32> -> vector<16x128xf32>
    %c0_54 = arith.constant 0 : index
    %c0_55 = arith.constant 0 : index
    %107 = vector.load %arg13[%c0_54, %c0_55] : memref<1x128xf32, #tpu.memory_space<vmem>>, vector<1x128xf32>
    %108 = vector.broadcast %107 : vector<1x128xf32> to vector<16x128xf32>
    %109 = arith.addf %106, %108 : vector<16x128xf32>
    %110 = arith.addf %109, %4 : vector<16x128xf32>
    %cst_56 = arith.constant dense<0.000000e+00> : vector<16xf32>
    %111 = vector.multi_reduction <add>, %110, %cst_56 [1] : vector<16x128xf32> to vector<16xf32>
    %112 = vector.shape_cast %111 : vector<16xf32> to vector<16x1xf32>
    %cst_57 = arith.constant 1.280000e+02 : f32
    %113 = vector.broadcast %cst_57 : f32 to vector<16x1xf32>
    %114 = arith.divf %112, %113 : vector<16x1xf32>
    %115 = vector.broadcast %114 : vector<16x1xf32> to vector<16x128xf32>
    %116 = arith.subf %110, %115 : vector<16x128xf32>
    %117 = arith.mulf %116, %116 : vector<16x128xf32>
    %cst_58 = arith.constant dense<0.000000e+00> : vector<16xf32>
    %118 = vector.multi_reduction <add>, %117, %cst_58 [1] : vector<16x128xf32> to vector<16xf32>
    %119 = vector.shape_cast %118 : vector<16xf32> to vector<16x1xf32>
    %cst_59 = arith.constant 1.280000e+02 : f32
    %120 = vector.broadcast %cst_59 : f32 to vector<16x1xf32>
    %121 = arith.divf %119, %120 : vector<16x1xf32>
    %cst_60 = arith.constant 9.99999974E-6 : f32
    %122 = vector.broadcast %cst_60 : f32 to vector<16x1xf32>
    %123 = arith.addf %121, %122 : vector<16x1xf32>
    %124 = math.rsqrt %123 : vector<16x1xf32>
    %125 = vector.broadcast %124 : vector<16x1xf32> to vector<16x128xf32>
    %126 = arith.mulf %116, %125 : vector<16x128xf32>
    %c0_61 = arith.constant 0 : index
    %c0_62 = arith.constant 0 : index
    %127 = vector.load %arg14[%c0_61, %c0_62] : memref<1x128xf32, #tpu.memory_space<vmem>>, vector<1x128xf32>
    %128 = vector.broadcast %127 : vector<1x128xf32> to vector<16x128xf32>
    %129 = arith.mulf %126, %128 : vector<16x128xf32>
    %c0_63 = arith.constant 0 : index
    %c0_64 = arith.constant 0 : index
    %130 = vector.load %arg15[%c0_63, %c0_64] : memref<1x128xf32, #tpu.memory_space<vmem>>, vector<1x128xf32>
    %131 = vector.broadcast %130 : vector<1x128xf32> to vector<16x128xf32>
    %132 = arith.addf %129, %131 : vector<16x128xf32>
    %c0_65 = arith.constant 0 : index
    %c0_66 = arith.constant 0 : index
    %c0_67 = arith.constant 0 : index
    %133 = vector.load %arg16[%c0_65, %c0_66, %c0_67] : memref<1x16x128xf32, #tpu.memory_space<vmem>>, vector<1x16x128xf32>
    %134 = vector.shape_cast %133 : vector<1x16x128xf32> to vector<16x128xf32>
    %135 = vector.shape_cast %132 : vector<16x128xf32> to vector<1x16x128xf32>
    tpu.vector_store %arg16[%c0_65, %c0_66, %c0_67], %135 {strides = array<i32>} : memref<1x16x128xf32, #tpu.memory_space<vmem>>, vector<1x16x128xf32>,
    return
  }
  func.func @transform_0(%arg0: i32, %arg1: i32) -> (i32, i32, i32) {
    %c0_i32 = arith.constant 0 : i32
    %c0_i32_0 = arith.constant 0 : i32
    return %arg0, %arg1, %c0_i32 : i32, i32, i32
  }
  func.func @transform_1(%arg0: i32, %arg1: i32) -> (i32, i32, i32) {
    %c0_i32 = arith.constant 0 : i32
    %c0_i32_0 = arith.constant 0 : i32
    %c0_i32_1 = arith.constant 0 : i32
    return %arg0, %c0_i32, %c0_i32_0 : i32, i32, i32
  }
  func.func @transform_2(%arg0: i32, %arg1: i32) -> (i32, i32, i32) {
    %c0_i32 = arith.constant 0 : i32
    %c0_i32_0 = arith.constant 0 : i32
    %c0_i32_1 = arith.constant 0 : i32
    return %arg0, %c0_i32, %c0_i32_0 : i32, i32, i32
  }
  func.func @transform_3(%arg0: i32, %arg1: i32) -> (i32, i32, i32) {
    %c0_i32 = arith.constant 0 : i32
    %c0_i32_0 = arith.constant 0 : i32
    return %arg0, %arg1, %c0_i32 : i32, i32, i32
  }
  func.func @transform_4(%arg0: i32, %arg1: i32) -> (i32, i32) {
    %c0_i32 = arith.constant 0 : i32
    %c0_i32_0 = arith.constant 0 : i32
    %c0_i32_1 = arith.constant 0 : i32
    return %c0_i32, %c0_i32_0 : i32, i32
  }
  func.func @transform_5(%arg0: i32, %arg1: i32) -> (i32, i32) {
    %c0_i32 = arith.constant 0 : i32
    %c0_i32_0 = arith.constant 0 : i32
    %c0_i32_1 = arith.constant 0 : i32
    return %c0_i32, %c0_i32_0 : i32, i32
  }
  func.func @transform_6(%arg0: i32, %arg1: i32) -> (i32, i32) {
    %c0_i32 = arith.constant 0 : i32
    %c0_i32_0 = arith.constant 0 : i32
    %c0_i32_1 = arith.constant 0 : i32
    return %c0_i32, %c0_i32_0 : i32, i32
  }
  func.func @transform_7(%arg0: i32, %arg1: i32) -> (i32, i32) {
    %c0_i32 = arith.constant 0 : i32
    %c0_i32_0 = arith.constant 0 : i32
    %c0_i32_1 = arith.constant 0 : i32
    return %c0_i32, %c0_i32_0 : i32, i32
  }
  func.func @transform_8(%arg0: i32, %arg1: i32) -> (i32, i32) {
    %c0_i32 = arith.constant 0 : i32
    %c0_i32_0 = arith.constant 0 : i32
    %c0_i32_1 = arith.constant 0 : i32
    return %c0_i32, %c0_i32_0 : i32, i32
  }
  func.func @transform_9(%arg0: i32, %arg1: i32) -> (i32, i32) {
    %c0_i32 = arith.constant 0 : i32
    %c0_i32_0 = arith.constant 0 : i32
    %c0_i32_1 = arith.constant 0 : i32
    return %c0_i32, %c0_i32_0 : i32, i32
  }
  func.func @transform_10(%arg0: i32, %arg1: i32) -> (i32, i32) {
    %c0_i32 = arith.constant 0 : i32
    %c0_i32_0 = arith.constant 0 : i32
    %c0_i32_1 = arith.constant 0 : i32
    return %c0_i32, %c0_i32_0 : i32, i32
  }
  func.func @transform_11(%arg0: i32, %arg1: i32) -> (i32, i32) {
    %c0_i32 = arith.constant 0 : i32
    %c0_i32_0 = arith.constant 0 : i32
    %c0_i32_1 = arith.constant 0 : i32
    return %c0_i32, %c0_i32_0 : i32, i32
  }
  func.func @transform_12(%arg0: i32, %arg1: i32) -> (i32, i32) {
    %c0_i32 = arith.constant 0 : i32
    %c0_i32_0 = arith.constant 0 : i32
    %c0_i32_1 = arith.constant 0 : i32
    return %c0_i32, %c0_i32_0 : i32, i32
  }
  func.func @transform_13(%arg0: i32, %arg1: i32) -> (i32, i32) {
    %c0_i32 = arith.constant 0 : i32
    %c0_i32_0 = arith.constant 0 : i32
    %c0_i32_1 = arith.constant 0 : i32
    return %c0_i32, %c0_i32_0 : i32, i32
  }
  func.func @transform_14(%arg0: i32, %arg1: i32) -> (i32, i32, i32) {
    %c0_i32 = arith.constant 0 : i32
    %c0_i32_0 = arith.constant 0 : i32
    return %arg0, %arg1, %c0_i32 : i32, i32, i32
  }
  func.func @transform_15(%arg0: i32, %arg1: i32) -> (i32, i32, i32, i32) {
    %c0_i32 = arith.constant 0 : i32
    %c0_i32_0 = arith.constant 0 : i32
    %c0_i32_1 = arith.constant 0 : i32
    return %c0_i32, %arg0, %arg1, %c0_i32_0 : i32, i32, i32, i32
  }
}

</mosaic_0001>

<bundles_post_ra>
// kernel: tpu_custom_call.1
= control target key start
LH: loop header
LB: loop body
LE: loop exit
PB: predicated region body
PF: predicated region fallthrough
CT: control target
= control target key end

     0   :  { %s2926_s0 = inlined_call_operand.hbm [shape: f32[2,16,128], index: 0, kind: input, shape index: {}]   ;;  %s2927_s1 = inlined_call_operand.hbm [shape: f32[2,16,128], index: 1, kind: input, shape index: {}]   ;;  %s2928_s2 = inlined_call_operand.hbm [shape: f32[2,16,128], index: 2, kind: input, shape index: {}]   ;;  %s2929_s3 = inlined_call_operand.hbm [shape: s8[2,16,16], index: 3, kind: input, shape index: {}]   ;;  %s2930_s4 = inlined_call_operand.hbm [shape: f32[128,128], index: 4, kind: input, shape index: {}]   ;;  %s2931_s5 = inlined_call_operand.vmem [shape: f32[1,128], index: 5, kind: input, shape index: {}]   ;;  %s2932_s6 = inlined_call_operand.hbm [shape: f32[128,128], index: 6, kind: input, shape index: {}]   ;;  %s2933_s7 = inlined_call_operand.vmem [shape: f32[1,128], index: 7, kind: input, shape index: {}]   ;;  %s2934_s8 = inlined_call_operand.hbm [shape: f32[128,128], index: 8, kind: input, shape index: {}]   ;;  %s2935_s9 = inlined_call_operand.vmem [shape: f32[1,128], index: 9, kind: input, shape index: {}]   ;;  %s2936_s10 = inlined_call_operand.hbm [shape: f32[128,128], index: 10, kind: input, shape index: {}]   ;;  %s2937_s11 = inlined_call_operand.vmem [shape: f32[1,128], index: 11, kind: input, shape index: {}]   ;;  %s2938_s12 = inlined_call_operand.vmem [shape: f32[1,128], index: 12, kind: input, shape index: {}]   ;;  %s2939_s13 = inlined_call_operand.vmem [shape: f32[1,128], index: 13, kind: input, shape index: {}]   ;;  %s2940_s14 = inlined_call_operand.hbm [shape: f32[2,16,128], index: 14, kind: output, shape index: {0}]   ;;  %s2941_s15 = inlined_call_operand.hbm [shape: f32[4,2,16,16], index: 15, kind: output, shape index: {1}]  }
   0x1   :  { %2955 = sst [smem:[#allocation38_spill]] %s2926_s0 }
   0x2   :  { %2956 = sst [smem:[#allocation39_spill]] %s2927_s1 }
   0x3   :  { %2957 = sst [smem:[#allocation40_spill]] %s2930_s4 }
   0x4   :  { %2958 = sst [smem:[#allocation41_spill]] %s2932_s6 }
   0x5   :  { %2959 = sst [smem:[#allocation42_spill]] %s2935_s9 }
   0x6   :  { %2960 = sst [smem:[#allocation43_spill]] %s2937_s11 }
   0x7   :  { %2961 = sst [smem:[#allocation44_spill]] %s2938_s12 }
   0x8   :  { %2962 = sst [smem:[#allocation45_spill]] %s2939_s13 }
   0x9   :  { %2963 = sst [smem:[#allocation46_spill]] %s2940_s14 }
   0xa   :  { %2964 = sst [smem:[#allocation47_spill]] %s2941_s15 }
   0xb   :  { %21 = vsyncpa [#allocation5], 0 }
   0xc   :  { %23 = vsyncpa [#allocation5 + $0x1], 0 }
   0xd   :  { %24 = vsyncpa [#allocation8], 0 }
   0xe   :  { %26 = vsyncpa [#allocation8 + $0x1], 0 }
   0xf   :  { %27 = vsyncpa [#allocation11], 0 }
  0x10   :  { %29 = vsyncpa [#allocation11 + $0x1], 0 }
  0x11   :  { %30 = vsyncpa [#allocation14], 0 }
  0x12   :  { %31 = vsyncpa [#allocation17], 0 }
  0x13   :  { %32 = vsyncpa [#allocation6], 0 }
  0x14   :  { %34 = vsyncpa [#allocation6 + $0x1], 0 }
  0x15   :  { %35 = vsyncpa [#allocation20], 0 }
  0x16   :  { %37 = vsyncpa [#allocation20 + $0x1], 0  ;;  %s2471_s18 = smov 0   ;;  %s2473_s19 = smov 0  }
  0x17   :  { %s2475_s20 = smov 0   ;;  %s2477_s21 = smov 0  }
  0x18   :  { %s2479_s22 = smov 0   ;;  %s2481_s23 = smov 0  }
  0x19 LB: > { %2965 = sst [smem:[#allocation31_spill]] %s2347_s18  ;;  %s2502_s24 = sadd.s32 4294967295, %s2367_s23   ;;  %s2367_s23 = sphi %s2481_s23, %s43_s23   ;;  %s2363_s22 = sphi %s2479_s22, %s3005_s22   ;;  %s2359_s21 = sphi %s2477_s21, %s3004_s21   ;;  %s2355_s20 = sphi %s2475_s20, %s3000_s20   ;;  %s2351_s19 = sphi %s2473_s19, %s3003_s19   ;;  %s2347_s18 = sphi %s2471_s18, %s3002_s18  }
  0x1a   : > { %2966 = sst [smem:[#allocation32_spill]] %s2355_s20  ;;  %s1741_s25 = sadd.s32 4294967294, %s2367_s23  }
  0x1b   : > { %2967 = sst [smem:[#allocation33_spill]] %s2359_s21  ;;  %p77_p0 = scmp.ne.s32.totalorder %s2351_s19, %s2347_s18 }
  0x1c   : > { %p78_p1 = scmp.eq.s32.totalorder %s2502_s24, 0  ;;  %p393_p2 = scmp.eq.s32.totalorder %s2502_s24, 1 }
  0x1d   : > { %p399_p3 = scmp.eq.s32.totalorder %s1741_s25, 1  ;;  %p1742_p5 = scmp.ge.s32.totalorder %s2367_s23, 1 }
  0x1e   : > { %p2511_p4 = por %p78_p1, %p77_p0  ;;  %p434_p7 = scmp.lt.s32.totalorder %s2367_s23, 3 }
  0x1f   : > { %p2516_p6 = por %p399_p3, %p77_p0  ;;  %s2971_s4 = sld [smem:[#allocation40_spill]] }
  0x20   : > { %p2524_p8 = pnand %p1742_p5, %p434_p7  ;;  %s2369_s17 = smov [#allocation12]  }
  0x21   : > { %s2969_s27 = scalar_select %p2516_p6, 1, 0 }
  0x22   : > { %p1849_p9 = pneg %p2524_p8  ;;  %s447_s25 = sshll.u32 %s2369_s17, 4  ;;  %s448_s25 = int_to_ptr.vmem [resolvable:$true] %s447_s25 }
  0x23   : > { %2970 = sst [smem:[#allocation34_spill]] %s2969_s27  ;;  %p1747_p11 = scmp.ge.s32.totalorder %s2367_s23, 2 }
  0x24   : > { %p2532_p10 = pnand %p1849_p9, %p78_p1  ;;  %s2974_s6 = sld [smem:[#allocation41_spill]] }
  0x25   : > { %s445_s30 = sshll.u32 %s2971_s4, 4  ;;  %s2945_s17 = smov 128   ;;  %s446_s30 = int_to_ptr.hbm [resolvable:$true] %s445_s30 }
  0x26   : > { %s2947_s18 = smov 8   ;;  %s2372_s15 = smov [#allocation13]  }
  0x27   : > { %1852 = dma.hbm_to_vmem [thread:$0]  (!%p2532_p10), %s446_s30, 2048, %s448_s25, [#allocation11], %s2945_s17, %s2945_s17, %s2947_s18  }
  0x28   : > { %s464_s14 = sshll.u32 %s2372_s15, 4  ;;  %s55_s4 = sadd.s32 1, %s2363_s22  ;;  %s465_s14 = int_to_ptr.vmem [resolvable:$true] %s464_s14 }
  0x29   : > { %s64_s29 = sadd.s32 1, %s2355_s20  ;;  %p57_p12 = scmp.ge.s32.totalorder %s55_s4, 2 }
  0x2a   : > { %s462_s27 = sshll.u32 %s2974_s6, 4  ;;  %p71_p13 = scmp.ne.s32.totalorder %s2355_s20, %s2351_s19  ;;  %s463_s27 = int_to_ptr.hbm [resolvable:$true] %s462_s27 }
  0x2b   : > { %1855 = dma.hbm_to_vmem [thread:$0]  (!%p2532_p10), %s463_s27, 2048, %s465_s14, [#allocation14], %s2945_s17, %s2945_s17, %s2947_s18  }
  0x2c   : > { %p72_p0 = scmp.eq.s32.totalorder %s2367_s23, 0  ;;  %p1886_p3 = scmp.lt.s32.totalorder %s2367_s23, 2 }
  0x2d   : > { %s3007_s4 = smov (%p57_p12, %s55_s4), 0  ;;  %p2560_p7 = por %p393_p2, %p71_p13 }
  0x2e   : > { %2975 = sst [smem:[#allocation35_spill]] %s3007_s4  ;;  %p73_p5 = por %p72_p0, %p71_p13 }
  0x2f   : > { %s2976_s15 = scalar_select %p2560_p7, 1, 0 }
  0x30   : > { %s59_s30 = ssub.s32 %s2363_s22, %s3007_s4  ;;  %s2567_s14 = sand.u32 1, %s2355_s20  }
  0x31   : > { %2977 = sst [smem:[#allocation36_spill]] %s2976_s15  ;;  %p62_p9 = scmp.eq.s32.totalorder %s59_s30, 0 }
  0x32   : > { %s2570_s27 = sshll.u32 %s2567_s14, 4  ;;  %s2573_s25 = sshll.u32 %s2363_s22, 4 }
  0x33   : > { %p2575_p12 = pnand %p1886_p3, %p73_p5  ;;  %s2954_s6 = sand.u32 1, %s2367_s23  }
  0x34   : > { %s2580_s18 = scalar_select %p62_p9, %s2355_s20, %s64_s29  }
  0x35   : > { %s2980_s1 = sld [smem:[#allocation39_spill]]  ;;  %s549_s30 = scalar_lea.vmem [#allocation7], %s2570_s27 }
  0x36   : > { %2979 = sst [smem:[#allocation37_spill]] %s2580_s18  ;;  %s557_s12 = sshll.u32 %s549_s30, 4  ;;  %s558_s12 = int_to_ptr.vmem [resolvable:$true] %s557_s12 }
  0x37   : > { %s2590_s11 = scalar_lea.sflag [#allocation8], %s2954_s6  ;;  %s2981_s29 = smov 8  }
  0x38   : > { %s2982_s18 = smov 128   ;;  %s479_s15 = sshll.u32 %s2934_s8, 4  ;;  %s480_s15 = int_to_ptr.hbm [resolvable:$true] %s479_s15 }
  0x39   : > { %s496_s6 = sshll.u32 %s2936_s10, 4  ;;  %s2983_s0 = sld [smem:[#allocation38_spill]]  ;;  %s497_s6 = int_to_ptr.hbm [resolvable:$true] %s496_s6 }
  0x3a   : > { %s525_s4 = scalar_lea.vmem [#allocation4], %s2570_s27 }
  0x3b   : > { %s554_s13 = scalar_lea.hbm %s2980_s1, %s2573_s25 }
  0x3c   : > { %s555_s21 = sshll.u32 %s554_s13, 4  ;;  %s2373_s13 = smov [#allocation15]   ;;  %s556_s21 = int_to_ptr.hbm [resolvable:$true] %s555_s21 }
  0x3d   : > { %1868 = dma.hbm_to_vmem [thread:$0]  (!%p2575_p12), %s556_s21, 256, %s558_s12, %s2590_s11, %s2982_s18, %s2982_s18, %s2981_s29  }
  0x3e   : > { %s481_s30 = sshll.u32 %s2373_s13, 4  ;;  %s2374_s12 = smov [#allocation16]   ;;  %s482_s30 = int_to_ptr.vmem [resolvable:$true] %s481_s30 }
  0x3f   : > { %1858 = dma.hbm_to_vmem [thread:$0]  (!%p2532_p10), %s480_s15, 2048, %s482_s30, [#allocation14], %s2982_s18, %s2982_s18, %s2981_s29  }
  0x40   : > { %s498_s20 = sshll.u32 %s2374_s12, 4  ;;  %s532_s9 = scalar_lea.hbm %s2983_s0, %s2573_s25  ;;  %s499_s20 = int_to_ptr.vmem [resolvable:$true] %s498_s20 }
  0x41   : > { %1861 = dma.hbm_to_vmem [thread:$0]  (!%p2532_p10), %s497_s6, 2048, %s499_s20, [#allocation17], %s2982_s18, %s2982_s18, %s2981_s29  }
  0x42   : > { %s535_s13 = sshll.u32 %s525_s4, 4  ;;  %s533_s15 = sshll.u32 %s532_s9, 4  ;;  %s536_s13 = int_to_ptr.vmem [resolvable:$true] %s535_s13  ;;  %s534_s15 = int_to_ptr.hbm [resolvable:$true] %s533_s15 }
  0x43   : > { %s522_s30 = scalar_lea.sflag [#allocation5], %s2567_s14  ;;  %s576_s12 = scalar_lea.hbm %s2928_s2, %s2573_s25 }
  0x44   : > { %1865 = dma.hbm_to_vmem [thread:$0]  (!%p2575_p12), %s534_s15, 256, %s536_s13, %s522_s30, %s2982_s18, %s2982_s18, %s2981_s29  }
  0x45   : > { %s571_s20 = scalar_lea.vmem [#allocation9], %s2570_s27  ;;  %s577_s1 = sshll.u32 %s576_s12, 4  ;;  %s578_s1 = int_to_ptr.hbm [resolvable:$true] %s577_s1 }
  0x46   : > { %s579_s21 = sshll.u32 %s571_s20, 4  ;;  %s1757_s9 = sshll.u32 %s2567_s14, 2  ;;  %s580_s21 = int_to_ptr.vmem [resolvable:$true] %s579_s21 }
  0x47   : > { %1871 = dma.hbm_to_vmem [thread:$0]  (!%p2575_p12), %s578_s1, 256, %s580_s21, %s2590_s11, %s2982_s18, %s2982_s18, %s2981_s29  }
  0x48   : > { %s1812_s4 = sshll.u32 %s2363_s22, 2  ;;  %s593_s30 = scalar_lea.vmem [#allocation10], %s1757_s9 }
  0x49   : > { %s600_s15 = scalar_lea.hbm %s2929_s3, %s1812_s4  ;;  %s603_s28 = sshll.u32 %s593_s30, 4  ;;  %s604_s28 = int_to_ptr.vmem [resolvable:$true] %s603_s28 }
  0x4a   : > { %s601_s25 = sshll.u32 %s600_s15, 4  ;;  %s2984_s27 = sand.u32 1, %s2367_s23   ;;  %s602_s25 = int_to_ptr.hbm [resolvable:$true] %s601_s25 }
  0x4b   : > { %s590_s6 = scalar_lea.sflag [#allocation11], %s2984_s27  ;;  %s2375_s12 = smov 32  }
  0x4c   : > { %s2376_s20 = smov 2   ;;  %615 = sbr.rel (%p2524_p8) target bundleno = 1766 (0x6e6), region = 76 }
  0x4d   : > { %1874 = dma.hbm_to_vmem [thread:$0]  (!%p2575_p12), %s602_s25, 64, %s604_s28, %s590_s6, %s2375_s12, %s2375_s12, %s2376_s20  }
  0x4e   : > { %s2648_s11 = sand.u32 (!%p2524_p8), 1, %s2351_s19  }
  0x4f   : > { %s2651_s0 = sshll.u32 (!%p2524_p8), %s2648_s11, 4  ;;  %s618_s18 = scalar_lea.sflag (!%p2524_p8), [#allocation5], %s2648_s11 }
  0x50   : > { %s621_s14 = scalar_lea.vmem (!%p2524_p8), [#allocation4], %s2651_s0 }
  0x51   : > { %2314 = dma.done.wait (%p2511_p4), %s618_s18, 256  }
  0x52   : > { %2316 = vsyncadd (%p2511_p4), %s618_s18, 4294967040  ;;  %s627_s16 = sand.u32 1, %s2502_s24   ;;  %s631_s29 = scalar_lea.vmem [#allocation7], %s2651_s0 }
  0x53   : > { %s628_s17 = scalar_lea.sflag [#allocation8], %s627_s16 }
  0x54   : > { %2318 = dma.done.wait (%p2511_p4), %s628_s17, 512  }
  0x55   : > { %2320 = vsyncadd (%p2511_p4), %s628_s17, 4294966784  ;;  %s1764_s21 = sshll.u32 %s2648_s11, 2  ;;  %s641_s1 = scalar_lea.vmem [#allocation9], %s2651_s0 }
  0x56   : > { %s648_s9 = scalar_lea.sflag [#allocation11], %s627_s16  ;;  %s2667_s4 = scalar_lea.vmem [#allocation10], %s1764_s21 }
  0x57   : > { %2322 = dma.done.wait (%p2511_p4), %s648_s9, 64  }
  0x58   : > { %2324 = vsyncadd (%p2511_p4), %s648_s9, 4294967232 }
  0x59   : > { %2326 = dma.done.wait (%p78_p1), [#allocation11], 2048  }
  0x5a   : > { %2328 = vsyncadd (%p78_p1), [#allocation11], 4294965248 }
  0x5b   : > { %2330 = dma.done.wait (%p78_p1), [#allocation14], 4096  }
  0x5c   : > { %2332 = vsyncadd (%p78_p1), [#allocation14], 4294963200 }
  0x5d   : > { %2334 = dma.done.wait (%p78_p1), [#allocation17], 2048  }
  0x5e   : > { %2336 = vsyncadd (%p78_p1), [#allocation17], 4294965248  ;;  %v768_v0 = vld [vmem:[#allocation13 + $0x78] sm:$0xff]  ;;  %v767_v1 = vld [vmem:[#allocation13 + $0x70] sm:$0xff]  ;;  %vm896_vm0 = vcmask 261120   ;;  %s2377_s13 = smov 64  }
  0x5f   : > { %773 = vmatpush.msra.mxu0 %v768_v0  ;;  %v860_v2 = vld [vmem:[#allocation12 + $0x78] sm:$0xff]  ;;  %v766_v3 = vld [vmem:[#allocation13 + $0x68] sm:$0xff]  ;;  %v859_v4 = vld [vmem:[#allocation12 + $0x70] sm:$0xff]  ;;  %s2378_s15 = smov 96   ;;  %s2985_s6 = sld [smem:[#allocation42_spill]]  ;;  %vm942_vm4 = vcmask 130048  }
  0x60   : > { %865 = vmatpush.msra.mxu2 %v860_v2  ;;  %v858_v5 = vld [vmem:[#allocation12 + $0x68] sm:$0xff]  ;;  %v765_v6 = vld [vmem:[#allocation13 + $0x60] sm:$0xff]  ;;  %v764_v8 = vld [vmem:[#allocation13 + $0x58] sm:$0xff]  ;;  %s2379_s12 = smov 32   ;;  %s1770_s20 = sshll.u32 %s2648_s11, 6  ;;  %vm1333_vm6 = vcmask 523264  }
  0x61   : > { %774 = vmatpush.msra.mxu0 %v767_v1  ;;  %v857_v7 = vld [vmem:[#allocation12 + $0x60] sm:$0xff]  ;;  %v856_v9 = vld [vmem:[#allocation12 + $0x58] sm:$0xff]  ;;  %v763_v10 = vld [vmem:[#allocation13 + $0x50] sm:$0xff]  ;;  %s2779_s18 = scalar_lea.vmem [#allocation19], %s1770_s20  ;;  %vm1336_vm7 = vcmask 785408   ;;  %s2990_s17 = sld [smem:[#allocation43_spill]] }
  0x62   : > { %866 = vmatpush.msra.mxu2 %v859_v4  ;;  %v855_v11 = vld [vmem:[#allocation12 + $0x50] sm:$0xff]  ;;  %v762_v12 = vld [vmem:[#allocation13 + $0x48] sm:$0xff]  ;;  %v761_v14 = vld [vmem:[#allocation13 + $0x40] sm:$0xff]  ;;  %s2992_s9 = sld [smem:[#allocation44_spill]] }
  0x63   : > { %775 = vmatpush.msra.mxu0 %v766_v3  ;;  %v854_v13 = vld [vmem:[#allocation12 + $0x48] sm:$0xff]  ;;  %v813_v15 = vld [vmem:[#allocation15 + $0x78] sm:$0xff]  ;;  %v812_v16 = vld [vmem:[#allocation15 + $0x70] sm:$0xff]  ;;  %s2993_s26 = sld [smem:[#allocation45_spill]] }
  0x64   : > { %867 = vmatpush.msra.mxu2 %v858_v5  ;;  %v853_v17 = vld [vmem:[#allocation12 + $0x40] sm:$0xff]  ;;  %818 = vmatpush.msra.mxu1 %v813_v15  ;;  %v760_v18 = vld [vmem:[#allocation13 + $0x38] sm:$0xff]  ;;  %v811_v19 = vld [vmem:[#allocation15 + $0x68] sm:$0xff]  ;;  %s2994_s25 = sld [smem:[#allocation46_spill]] }
  0x65   : > { %776 = vmatpush.msra.mxu0 %v765_v6  ;;  %v852_v20 = vld [vmem:[#allocation12 + $0x38] sm:$0xff]  ;;  %v759_v21 = vld [vmem:[#allocation13 + $0x30] sm:$0xff]  ;;  %v758_v22 = vld [vmem:[#allocation13 + $0x28] sm:$0xff] }
  0x66   : > { %868 = vmatpush.msra.mxu2 %v857_v7  ;;  %819 = vmatpush.msra.mxu1 %v812_v16  ;;  %v810_v23 = vld [vmem:[#allocation15 + $0x60] sm:$0xff]  ;;  %v851_v24 = vld [vmem:[#allocation12 + $0x30] sm:$0xff]  ;;  %v850_v25 = vld [vmem:[#allocation12 + $0x28] sm:$0xff] }
  0x67   : > { %777 = vmatpush.msra.mxu0 %v764_v8  ;;  %v809_v26 = vld [vmem:[#allocation15 + $0x58] sm:$0xff]  ;;  %v757_v27 = vld [vmem:[#allocation13 + $0x20] sm:$0xff]  ;;  %v808_v28 = vld [vmem:[#allocation15 + $0x50] sm:$0xff] }
  0x68   : > { %869 = vmatpush.msra.mxu2 %v856_v9  ;;  %820 = vmatpush.msra.mxu1 %v811_v19  ;;  %v849_v29 = vld [vmem:[#allocation12 + $0x20] sm:$0xff]  ;;  %v756_v30 = vld [vmem:[#allocation13 + $0x18] sm:$0xff]  ;;  %v807_v31 = vld [vmem:[#allocation15 + $0x48] sm:$0xff] }
  0x69   : > { %778 = vmatpush.msra.mxu0 %v763_v10  ;;  %v848_v32 = vld [vmem:[#allocation12 + $0x18] sm:$0xff]  ;;  %v755_v33 = vld [vmem:[#allocation13 + $0x10] sm:$0xff]  ;;  %v806_v34 = vld [vmem:[#allocation15 + $0x40] sm:$0xff] }
  0x6a   : > { %870 = vmatpush.msra.mxu2 %v855_v11  ;;  %821 = vmatpush.msra.mxu1 %v810_v23  ;;  %v847_v35 = vld [vmem:[#allocation12 + $0x10] sm:$0xff]  ;;  %v754_v36 = vld [vmem:[#allocation13 + $0x8] sm:$0xff]  ;;  %v805_v37 = vld [vmem:[#allocation15 + $0x38] sm:$0xff] }
  0x6b   : > { %779 = vmatpush.msra.mxu0 %v762_v12  ;;  %v846_v38 = vld [vmem:[#allocation12 + $0x8] sm:$0xff]  ;;  %v753_v39 = vld [vmem:[#allocation13] sm:$0xff]  ;;  %v804_v40 = vld [vmem:[#allocation15 + $0x30] sm:$0xff]  ;;  %v2380_v12 = vmov 0  }
  0x6c   : > { %871 = vmatpush.msra.mxu2 %v854_v13  ;;  %822 = vmatpush.msra.mxu1 %v809_v26  ;;  %v749_v41 = vld [vmem:[%s631_s29] sm:$0xff]  ;;  %v845_v42 = vld [vmem:[#allocation12] sm:$0xff]  ;;  %v800_v47 = vld [vmem:[#allocation15 + $0x10] sm:$0xff] }
  0x6d   : > { %780 = vmatpush.msra.mxu0 %v761_v14  ;;  %v2689_v43 = vld [vmem:[%s621_s14] sm:$0xff]  ;;  %v802_v45 = vld [vmem:[#allocation15 + $0x20] sm:$0xff] }
  0x6e   : > { %872 = vmatpush.msra.mxu2 %v853_v17  ;;  %823 = vmatpush.msra.mxu1 %v808_v28  ;;  %v803_v44 = vld [vmem:[#allocation15 + $0x28] sm:$0xff]  ;;  %v801_v46 = vld [vmem:[#allocation15 + $0x18] sm:$0xff]  ;;  %v750_v48 = vld [vmem:[%s631_s29 + $0x8] sm:$0xff]  ;;  %s2991_s29 = sld [smem:[#allocation33_spill]] }
  0x6f   : > { %781 = vmatpush.msra.mxu0 %v760_v18  ;;  %v2696_v49 = vld [vmem:[%s621_s14 + $0x8] sm:$0xff]  ;;  %v799_v50 = vld [vmem:[#allocation15 + $0x8] sm:$0xff]  ;;  %v1977_v55 = vld [vmem:[%s2933_s7] ss:$0 sm:$0xff] }
  0x70   : > { %873 = vmatpush.msra.mxu2 %v852_v20  ;;  %824 = vmatpush.msra.mxu1 %v807_v31  ;;  %v798_v51 = vld [vmem:[#allocation15] sm:$0xff]  ;;  %v751_v52 = vld [vmem:[%s641_s1] sm:$0xff] }
  0x71   : > { %782 = vmatpush.msra.mxu0 %v759_v21  ;;  %v752_v53 = vld [vmem:[%s641_s1 + $0x8] sm:$0xff]  ;;  %v1978_v59 = vld [vmem:[%s2931_s5] ss:$0 sm:$0xff]  ;;  %v893_v14 = vld [vmem:[%s2667_s4 + $0x2] sm:$0x3]  ;;  %s2281_s1 = scalar_lea.hbm %s2994_s25, 32 }
  0x72   : > { %874 = vmatpush.msra.mxu2 %v851_v24  ;;  %825 = vmatpush.msra.mxu1 %v806_v34  ;;  %v1979_v1 = vld [vmem:[%s2985_s6] ss:$0 sm:$0xff]  ;;  %vm895_vm2 = vnez %v893_v14 }
  0x73   : > { %783 = vmatpush.msra.mxu0 %v758_v22  ;;  %v892_v11 = vld [vmem:[%s2667_s4] sm:$0x3]  ;;  %v935_v19 = vsel %vm895_vm2, 16843009, %v2380_v12 }
  0x74   : > { %875 = vmatpush.msra.mxu2 %v850_v25  ;;  %826 = vmatpush.msra.mxu1 %v805_v37  ;;  %vm894_vm1 = vnez %v892_v11  ;;  %v937_v22 = vunpack.c.0.s8 %v935_v19 }
  0x75   : > { %784 = vmatpush.msra.mxu0 %v757_v27  ;;  %v934_v13 = vsel %vm894_vm1, 16843009, %v2380_v12 }
  0x76   : > { %876 = vmatpush.msra.mxu2 %v849_v29  ;;  %827 = vmatpush.msra.mxu1 %v804_v40  ;;  %v936_v15 = vunpack.c.0.s8 %v934_v13  ;;  %vm2755_vm5 = vcmp.ne.s32.totalorder %v937_v22, 0 }
  0x77   : > { %785 = vmatpush.msra.mxu0 %v756_v30 }
  0x78   : > { %877 = vmatpush.msra.mxu2 %v848_v32  ;;  %828 = vmatpush.msra.mxu1 %v803_v44  ;;  %vm2748_vm3 = vcmp.ne.s32.totalorder %v936_v15, 0 }
  0x79   : > { %786 = vmatpush.msra.mxu0 %v755_v33 }
  0x7a   : > { %878 = vmatpush.msra.mxu2 %v847_v35  ;;  %829 = vmatpush.msra.mxu1 %v802_v45 }
  0x7b   : > { %787 = vmatpush.msra.mxu0 %v754_v36 }
  0x7c   : > { %879 = vmatpush.msra.mxu2 %v846_v38  ;;  %830 = vmatpush.msra.mxu1 %v801_v46 }
  0x7d   : > { %788 = vmatpush.msra.mxu0 %v753_v39 }
  0x7e   : > { %789 = vmatmul.f32.vlgmr.msra.gmra.mxu0 %v749_v41  ;;  %880 = vmatpush.msra.mxu2 %v845_v42 }
  0x7f   : > { %881 = vmatmul.f32.vlgmr.msra.gmra.mxu2 %v2689_v43  ;;  %831 = vmatpush.msra.mxu1 %v800_v47 }
  0x81   : > { %832 = vmatpush.msra.mxu1 %v799_v50 }
  0x83   : > { %833 = vmatpush.msra.mxu1 %v798_v51 }
  0x84   : > { %834 = vmatmul.f32.vlgmr.msra.gmra.mxu1 %v751_v52 }
  0x86   : > { %792 = vmatmul.f32.gmra.mxu0 %v750_v48 }
  0x87   : > { %884 = vmatmul.f32.gmra.mxu2 %v2696_v49 }
  0x8c   : > { %837 = vmatmul.f32.gmra.mxu1 %v752_v53 }
  0xfb   : > { %v790_v54 = vpop.f32.mrf.mxu0 }
  0xfc   : > { %v791_v60 = vadd.f32 %v1977_v55, %v790_v54 }
 0x101   : > { %v835_v0 = vpop.f32.mrf.mxu1 }
 0x102   : > { %v882_v58 = vpop.f32.mrf.mxu2  ;;  %v2729_v3 = vadd.f32 %v1979_v1, %v835_v0 }
 0x103   : > { %v793_v56 = vpop.f32.mrf.mxu0  ;;  %v2717_v61 = vadd.f32 %v1978_v59, %v882_v58 }
 0x104   : > { %v2706_v57 = vadd.f32 %v1977_v55, %v793_v56 }
 0x106   : > { %1107 = vrot.lane.b32.xlu1 %v2706_v57, %s2377_s13  ;;  %1002 = vrot.lane.b32.xlu2 %v2706_v57, %s2378_s15 }
 0x107   : > { %1771 = vmatpush.xpose.msk.msra.mxu3 %vm896_vm0, %v2706_v57 }
 0x109   : > { %v838_v2 = vpop.f32.mrf.mxu1 }
 0x10a   : > { %v885_v62 = vpop.f32.mrf.mxu2  ;;  %v2731_v4 = vadd.f32 %v1979_v1, %v838_v2 }
 0x10b   : > { %1772 = vmatpush.xpose.msk.msra.mxu3 %vm896_vm0, %v791_v60  ;;  %v886_v63 = vadd.f32 %v1978_v59, %v885_v62 }
 0x10c   : > { %v1962_v22 = vpack.i.bf16 %v2729_v3, %v2731_v4 }
 0x10e   : > { %1773 = vmatmul.msk.f32.vlgmr.msra.gmra.mxu3 %vm896_vm0, %v2717_v61  ;;  %1000 = vrot.lane.b32.xlu2 %v791_v60, %s2378_s15 }
 0x10f   : > { %987 = vmatpush.msrb.mxu3 %v2731_v4 }
 0x111   : > { %988 = vmatpush.msrb.mxu3 %v2729_v3 }
 0x116   : > { %1774 = vmatmul.msk.f32.gmra.mxu3 %vm896_vm0, %v886_v63  ;;  %1105 = vrot.lane.b32.xlu2 %v791_v60, %s2377_s13 }
 0x11e   : > { %998 = vrot.lane.b32.xlu2 %v886_v63, %s2378_s15 }
 0x126   : > { %1101 = vrot.lane.b32.xlu2 %v2717_v61, %s2377_s13 }
 0x12e   : > { %1208 = vrot.lane.b32.xlu2 %v791_v60, %s2379_s12 }
 0x136   : > { %1206 = vrot.lane.b32.xlu2 %v886_v63, %s2379_s12 }
 0x160   : > { %v1003_v5 = vpop.permute.xlu2 %1002 }
 0x161   : > { %1777 = vmatpush.xpose.msk.msra.mxu3 %vm896_vm0, %v1003_v5 }
 0x168   : > { %v1001_v6 = vpop.permute.xlu2 %1000 }
 0x169   : > { %1778 = vmatpush.xpose.msk.msra.mxu3 %vm896_vm0, %v1001_v6 }
 0x170   : > { %v1106_v7 = vpop.permute.xlu2 %1105 }
 0x178   : > { %v1108_v8 = vpop.permute.xlu1 %1107  ;;  %v2741_v9 = vpop.permute.xlu2 %998 }
 0x179   : > { %1785 = vmatpush.xpose.msk.msrb.mxu2 %vm896_vm0, %v1108_v8 }
 0x17d   : > { %1786 = vmatpush.xpose.msk.msrb.mxu2 %vm896_vm0, %v1106_v7 }
 0x180   : > { %v1102_v10 = vpop.permute.xlu2 %1101 }
 0x181   : > { %1787 = vmatmul.msk.f32.vlgmr.msrb.gmra.mxu2 %vm896_vm0, %v1102_v10 }
 0x188   : > { %v1209_v51 = vpop.permute.xlu2 %1208 }
 0x191   : > { %v926_v16 = vpop.f32.mrf.mxu3 }
 0x192   : > { %v932_v18 = vmul.f32 0.17677669, %v926_v16 }
 0x194   : > { %v940_v20 = vsel %vm2748_vm3, -inf, %v932_v18 }
 0x195   : > { %v943_v21 = vsel %vm942_vm4, %v940_v20, -inf }
 0x196   : > { %944 = vmax.xlane.f32.xlu0 %v943_v21 }
 0x199   : > { %v929_v23 = vpop.f32.mrf.mxu3 }
 0x19a   : > { %v933_v25 = vmul.f32 0.17677669, %v929_v23 }
 0x19c   : > { %v941_v26 = vsel %vm2755_vm5, -inf, %v933_v25 }
 0x19d   : > { %v946_v27 = vsel %vm942_vm4, %v941_v26, -inf }
 0x19e   : > { %947 = vmax.xlane.f32.xlu0 %v946_v27 }
 0x1b2   : > { %996 = vrot.lane.b32.xlu0 %v2717_v61, %s2378_s15 }
 0x1ba   : > { %1210 = vrot.lane.b32.xlu0 %v2706_v57, %s2379_s12  ;;  %v1207_v57 = vpop.permute.xlu2 %1206 }
 0x1c2   : > { %1103 = vrot.lane.b32.xlu0 %v886_v63, %s2377_s13 }
 0x204   : > { %v1134_v28 = vpop.f32.mrf.mxu2 }
 0x205   : > { %v1140_v29 = vmul.f32 0.17677669, %v1134_v28 }
 0x207   : > { %v2769_v30 = vsel %vm2748_vm3, -inf, %v1140_v29 }
 0x208   : > { %v1144_v31 = vsel %vm942_vm4, %v2769_v30, -inf }
 0x209   : > { %v945_v32 = vpop.xlane.xlu0 %944  ;;  %1145 = vmax.xlane.f32.xlu2 %v1144_v31 }
 0x20a   : > { %v949_v33 = vsub.f32 %v940_v20, %v945_v32 }
 0x20c   : > { %v951_v34 = vmul.f32 1.442695, %v949_v33 }
 0x20e   : > { %1983 = vpow2.f32 %v951_v34 }
 0x211   : > { %v948_v35 = vpop.xlane.xlu0 %947 }
 0x212   : > { %v950_v36 = vsub.f32 %v941_v26, %v948_v35 }
 0x214   : > { %v1984_v37 = vpop.eup %1983  ;;  %v953_v38 = vmul.f32 1.442695, %v950_v36 }
 0x215   : > { %v955_v39 = vsel %vm942_vm4, %v1984_v37, 0.0 }
 0x216   : > { %1985 = vpow2.f32 %v953_v38  ;;  %956 = vadd.xlane.f32.xlu1 %v955_v39 }
 0x21c   : > { %v1986_v40 = vpop.eup %1985 }
 0x21d   : > { %v958_v41 = vsel %vm942_vm4, %v1986_v40, 0.0 }
 0x21e   : > { %959 = vadd.xlane.f32.xlu1 %v958_v41 }
 0x224   : > { %v997_v42 = vpop.permute.xlu0 %996 }
 0x22c   : > { %v1211_v44 = vpop.permute.xlu0 %1210 }
 0x234   : > { %v1104_v45 = vpop.permute.xlu0 %1103 }
 0x235   : > { %1788 = vmatmul.msk.f32.gmra.mxu2 %vm896_vm0, %v1104_v45 }
 0x237   : > { %1204 = vrot.lane.b32.xlu1 %v2717_v61, %s2379_s12 }
 0x27c   : > { %v1146_v2 = vpop.xlane.xlu2 %1145 }
 0x27d   : > { %v1150_v7 = vsub.f32 %v2769_v30, %v1146_v2 }
 0x27f   : > { %v1152_v10 = vmul.f32 1.442695, %v1150_v7 }
 0x289   : > { %v957_v46 = vpop.xlane.xlu1 %956 }
 0x28a   : > { %1987 = vrcp.f32 %v957_v46 }
 0x290   : > { %v1988_v47 = vpop.eup %1987 }
 0x291   : > { %v960_v48 = vpop.xlane.xlu1 %959  ;;  %v963_v50 = vmul.f32 %v1988_v47, %v1984_v37 }
 0x292   : > { %1989 = vrcp.f32 %v960_v48 }
 0x293   : > { %965 = vst.msk [vmem:[%s2779_s18] sm:$0xff] %vm942_vm4, %v963_v50  ;;  %1775 = vmatmul.msk.f32.vlgmr.msrb.gmra.mxu3 %vm942_vm4, %v963_v50  ;;  %1991 = vpow2.f32 %v1152_v10 }
 0x294   : > { %1793 = vmatpush.xpose.msk.msrb.mxu3 %vm896_vm0, %v1211_v44 }
 0x298   : > { %v1990_v52 = vpop.eup %1989  ;;  %1794 = vmatpush.xpose.msk.msrb.mxu3 %vm896_vm0, %v1209_v51 }
 0x299   : > { %v964_v53 = vmul.f32 %v1990_v52, %v1986_v40  ;;  %v1992_v16 = vpop.eup %1991 }
 0x29a   : > { %v1156_v20 = vsel %vm942_vm4, %v1992_v16, 0.0 }
 0x29b   : > { %966 = vst.msk [vmem:[%s2779_s18 + $0x8] sm:$0xff] %vm942_vm4, %v964_v53  ;;  %1776 = vmatmul.msk.f32.gmra.mxu3 %vm942_vm4, %v964_v53 }
 0x2a3   : > { %1779 = vmatmul.msk.f32.vlgmr.msra.gmra.mxu3 %vm896_vm0, %v997_v42 }
 0x2a9   : > { %v1205_v54 = vpop.permute.xlu1 %1204 }
 0x2ab   : > { %1780 = vmatmul.msk.f32.gmra.mxu3 %vm896_vm0, %v2741_v9 }
 0x2b3   : > { %1795 = vmatmul.msk.f32.vlgmr.msrb.gmra.mxu3 %vm896_vm0, %v1205_v54 }
 0x2b8   : > { %v1137_v55 = vpop.f32.mrf.mxu2 }
 0x2b9   : > { %v1141_v56 = vmul.f32 0.17677669, %v1137_v55 }
 0x2bb   : > { %1796 = vmatmul.msk.f32.gmra.mxu3 %vm896_vm0, %v1207_v57  ;;  %v1143_v58 = vsel %vm2755_vm5, -inf, %v1141_v56 }
 0x2bc   : > { %v1147_v59 = vsel %vm942_vm4, %v1143_v58, -inf }
 0x2bd   : > { %1148 = vmax.xlane.f32.xlu0 %v1147_v59 }
 0x316   : > { %v2797_v60 = vpop.f32.mrf.mxu3 }
 0x31e   : > { %v2799_v61 = vpop.f32.mrf.mxu3 }
 0x326   : > { %v1029_v62 = vpop.f32.mrf.mxu3 }
 0x327   : > { %v1035_v63 = vmul.f32 0.17677669, %v1029_v62 }
 0x329   : > { %v1037_v0 = vsel %vm2748_vm3, -inf, %v1035_v63 }
 0x32a   : > { %v1039_v1 = vsel %vm942_vm4, %v1037_v0, -inf }
 0x32b   : > { %1040 = vmax.xlane.f32.xlu1 %v1039_v1 }
 0x32e   : > { %v1032_v5 = vpop.f32.mrf.mxu3 }
 0x32f   : > { %v1036_v6 = vmul.f32 0.17677669, %v1032_v5 }
 0x330   : > { %v1149_v17 = vpop.xlane.xlu0 %1148 }
 0x331   : > { %v1038_v8 = vsel %vm2755_vm5, -inf, %v1036_v6  ;;  %v1151_v23 = vsub.f32 %v1143_v58, %v1149_v17  ;;  %v1351_v17 = vld [vmem:[#allocation16 + $0x60] sm:$0xff] }
 0x332   : > { %v1042_v9 = vsel %vm942_vm4, %v1038_v8, -inf }
 0x333   : > { %1043 = vmax.xlane.f32.xlu0 %v1042_v9  ;;  %v1154_v25 = vmul.f32 1.442695, %v1151_v23  ;;  %v1350_v23 = vld [vmem:[#allocation16 + $0x58] sm:$0xff] }
 0x335   : > { %1993 = vpow2.f32 %v1154_v25  ;;  %v1349_v25 = vld [vmem:[#allocation16 + $0x50] sm:$0xff] }
 0x336   : > { %v1237_v11 = vpop.f32.mrf.mxu3 }
 0x337   : > { %v1243_v12 = vmul.f32 0.17677669, %v1237_v11 }
 0x339   : > { %v1245_v13 = vsel %vm2748_vm3, -inf, %v1243_v12 }
 0x33a   : > { %v1247_v14 = vsel %vm942_vm4, %v1245_v13, -inf }
 0x33b   : > { %1248 = vmax.xlane.f32.xlu1 %v1247_v14  ;;  %v1994_v26 = vpop.eup %1993 }
 0x33c   : > { %v1159_v27 = vsel %vm942_vm4, %v1994_v26, 0.0 }
 0x33e   : > { %v1240_v15 = vpop.f32.mrf.mxu3 }
 0x33f   : > { %v1244_v18 = vmul.f32 0.17677669, %v1240_v15 }
 0x341   : > { %v1246_v19 = vsel %vm2755_vm5, -inf, %v1244_v18 }
 0x342   : > { %v1250_v21 = vsel %vm942_vm4, %v1246_v19, -inf }
 0x343   : > { %1157 = vadd.xlane.f32.xlu1 %v1156_v20  ;;  %1251 = vmax.xlane.f32.xlu2 %v1250_v21  ;;  %v1354_v20 = vld [vmem:[#allocation16 + $0x78] sm:$0xff]  ;;  %v1353_v21 = vld [vmem:[#allocation16 + $0x70] sm:$0xff] }
 0x344   : > { %1359 = vmatpush.msrb.mxu1 %v1354_v20 }
 0x346   : > { %1360 = vmatpush.msrb.mxu1 %v1353_v21  ;;  %v1982_v21 = vld [vmem:[%s2993_s26] ss:$0 sm:$0xff] }
 0x347   : > { %1963 = vrot.lane.b32.xlu0 %v1962_v22, %s2378_s15 }
 0x371   : > { %1160 = vadd.xlane.f32.xlu0 %v1159_v27  ;;  %v1348_v27 = vld [vmem:[#allocation16 + $0x48] sm:$0xff] }
 0x39e   : > { %v1041_v24 = vpop.xlane.xlu1 %1040 }
 0x39f   : > { %v1045_v28 = vsub.f32 %v1037_v0, %v1041_v24  ;;  %v1347_v24 = vld [vmem:[#allocation16 + $0x40] sm:$0xff] }
 0x3a1   : > { %v1047_v29 = vmul.f32 1.442695, %v1045_v28  ;;  %v1346_v28 = vld [vmem:[#allocation16 + $0x38] sm:$0xff] }
 0x3a3   : > { %1995 = vpow2.f32 %v1047_v29  ;;  %v1345_v29 = vld [vmem:[#allocation16 + $0x30] sm:$0xff] }
 0x3a6   : > { %v1044_v30 = vpop.xlane.xlu0 %1043 }
 0x3a7   : > { %v1046_v31 = vsub.f32 %v1038_v8, %v1044_v30  ;;  %v1344_v30 = vld [vmem:[#allocation16 + $0x28] sm:$0xff] }
 0x3a9   : > { %v1996_v32 = vpop.eup %1995  ;;  %v1049_v33 = vmul.f32 1.442695, %v1046_v31  ;;  %v1343_v31 = vld [vmem:[#allocation16 + $0x20] sm:$0xff] }
 0x3aa   : > { %v1051_v3 = vsel %vm942_vm4, %v1996_v32, 0.0 }
 0x3ab   : > { %1997 = vpow2.f32 %v1049_v33  ;;  %1052 = vadd.xlane.f32.xlu1 %v1051_v3  ;;  %v1341_v33 = vld [vmem:[#allocation16 + $0x10] sm:$0xff]  ;;  %v1340_v3 = vld [vmem:[#allocation16 + $0x8] sm:$0xff] }
 0x3ae   : > { %v1249_v4 = vpop.xlane.xlu1 %1248 }
 0x3af   : > { %v1253_v34 = vsub.f32 %v1245_v13, %v1249_v4  ;;  %v1339_v4 = vld [vmem:[#allocation16] sm:$0xff] }
 0x3b1   : > { %v1998_v35 = vpop.eup %1997  ;;  %v1255_v36 = vmul.f32 1.442695, %v1253_v34 }
 0x3b2   : > { %v1054_v37 = vsel %vm942_vm4, %v1998_v35, 0.0 }
 0x3b3   : > { %1999 = vpow2.f32 %v1255_v36  ;;  %1055 = vadd.xlane.f32.xlu2 %v1054_v37 }
 0x3b6   : > { %v1158_v38 = vpop.xlane.xlu1 %1157  ;;  %v1252_v47 = vpop.xlane.xlu2 %1251 }
 0x3b7   : > { %2001 = vrcp.f32 %v1158_v38  ;;  %v1254_v48 = vsub.f32 %v1246_v19, %v1252_v47  ;;  %v1980_v47 = vld [vmem:[%s2990_s17] ss:$0 sm:$0xff] }
 0x3b9   : > { %v2000_v39 = vpop.eup %1999  ;;  %v1964_v40 = vpop.permute.xlu0 %1963  ;;  %v1257_v51 = vmul.f32 1.442695, %v1254_v48 }
 0x3ba   : > { %v1259_v41 = vsel %vm942_vm4, %v2000_v39, 0.0  ;;  %v1965_v42 = vunpack.i.l.bf16 %v1964_v40  ;;  %v1966_v44 = vunpack.i.h.bf16 %v1964_v40 }
 0x3bb   : > { %1260 = vadd.xlane.f32.xlu1 %v1259_v41 }
 0x3bc   : > { %1092 = vmatpush.msrb.mxu0 %v1965_v42 }
 0x3bd   : > { %v2002_v45 = vpop.eup %2001 }
 0x3be   : > { %v1164_v46 = vmul.f32 %v2002_v45, %v1992_v16  ;;  %1093 = vmatpush.msrb.mxu0 %v1966_v44 }
 0x3c0   : > { %1789 = vst.msk [vmem:[%s2779_s18 + $0x20] sm:$0xff] %vm942_vm4, %v1164_v46 }
 0x3cb   : > { %1968 = vrot.lane.b32.xlu2 %v1962_v22, %s2377_s13 }
 0x3d4   : > { %1973 = vrot.lane.b32.xlu1 %v1962_v22, %s2379_s12  ;;  %v1352_v22 = vld [vmem:[#allocation16 + $0x68] sm:$0xff] }
 0x3d5   : > { %1361 = vmatpush.msrb.mxu1 %v1352_v22 }
 0x3d7   : > { %1362 = vmatpush.msrb.mxu1 %v1351_v17 }
 0x3d9   : > { %1363 = vmatpush.msrb.mxu1 %v1350_v23 }
 0x3db   : > { %1364 = vmatpush.msrb.mxu1 %v1349_v25 }
 0x3dd   : > { %1365 = vmatpush.msrb.mxu1 %v1348_v27 }
 0x3df   : > { %1366 = vmatpush.msrb.mxu1 %v1347_v24 }
 0x3e1   : > { %1367 = vmatpush.msrb.mxu1 %v1346_v28 }
 0x3e3   : > { %1368 = vmatpush.msrb.mxu1 %v1345_v29 }
 0x3e4   : > { %v1161_v50 = vpop.xlane.xlu0 %1160 }
 0x3e5   : > { %2003 = vrcp.f32 %v1161_v50  ;;  %1369 = vmatpush.msrb.mxu1 %v1344_v30 }
 0x3e6   : > { %2005 = vpow2.f32 %v1257_v51 }
 0x3e7   : > { %1370 = vmatpush.msrb.mxu1 %v1343_v31 }
 0x3eb   : > { %v2004_v52 = vpop.eup %2003 }
 0x3ec   : > { %v1165_v53 = vmul.f32 %v2004_v52, %v1994_v26  ;;  %v2006_v54 = vpop.eup %2005 }
 0x3ed   : > { %v1262_v55 = vsel %vm942_vm4, %v2006_v54, 0.0 }
 0x3ee   : > { %1790 = vst.msk [vmem:[%s2779_s18 + $0x28] sm:$0xff] %vm942_vm4, %v1165_v53 }
 0x3f4   : > { %1263 = vadd.xlane.f32.xlu2 %v1262_v55 }
 0x41e   : > { %v1053_v56 = vpop.xlane.xlu1 %1052 }
 0x41f   : > { %2007 = vrcp.f32 %v1053_v56 }
 0x425   : > { %v2008_v57 = vpop.eup %2007 }
 0x426   : > { %v1056_v58 = vpop.xlane.xlu2 %1055  ;;  %v1059_v59 = vmul.f32 %v2008_v57, %v1996_v32  ;;  %v1342_v32 = vld [vmem:[#allocation16 + $0x18] sm:$0xff] }
 0x427   : > { %2009 = vrcp.f32 %v1056_v58  ;;  %1371 = vmatpush.msrb.mxu1 %v1342_v32 }
 0x428   : > { %1781 = vst.msk [vmem:[%s2779_s18 + $0x10] sm:$0xff] %vm942_vm4, %v1059_v59  ;;  %1783 = vmatmul.msk.f32.vlgmr.msrb.gmra.mxu0 %vm942_vm4, %v1059_v59 }
 0x429   : > { %1372 = vmatpush.msrb.mxu1 %v1341_v33 }
 0x42b   : > { %1373 = vmatpush.msrb.mxu1 %v1340_v3 }
 0x42d   : > { %v2010_v62 = vpop.eup %2009  ;;  %1374 = vmatpush.msrb.mxu1 %v1339_v4 }
 0x42e   : > { %v1261_v63 = vpop.xlane.xlu1 %1260  ;;  %v1969_v0 = vpop.permute.xlu2 %1968  ;;  %v1060_v1 = vmul.f32 %v2010_v62, %v1998_v35 }
 0x42f   : > { %2011 = vrcp.f32 %v1261_v63  ;;  %v1970_v2 = vunpack.i.l.bf16 %v1969_v0  ;;  %v1971_v5 = vunpack.i.h.bf16 %v1969_v0 }
 0x430   : > { %1782 = vst.msk [vmem:[%s2779_s18 + $0x18] sm:$0xff] %vm942_vm4, %v1060_v1  ;;  %1784 = vmatmul.msk.f32.gmra.mxu0 %vm942_vm4, %v1060_v1 }
 0x431   : > { %1195 = vmatpush.msra.mxu2 %v1970_v2 }
 0x433   : > { %1196 = vmatpush.msra.mxu2 %v1971_v5 }
 0x434   : > { %1791 = vmatmul.msk.f32.vlgmr.msra.gmra.mxu2 %vm942_vm4, %v1164_v46 }
 0x435   : > { %v2012_v6 = vpop.eup %2011 }
 0x436   : > { %v1267_v7 = vmul.f32 %v2012_v6, %v2000_v39 }
 0x438   : > { %1797 = vst.msk [vmem:[%s2779_s18 + $0x30] sm:$0xff] %vm942_vm4, %v1267_v7 }
 0x43c   : > { %1792 = vmatmul.msk.f32.gmra.mxu2 %vm942_vm4, %v1165_v53 }
 0x446   : > { %v1974_v8 = vpop.permute.xlu1 %1973 }
 0x447   : > { %v1975_v9 = vunpack.i.l.bf16 %v1974_v8  ;;  %v1976_v10 = vunpack.i.h.bf16 %v1974_v8 }
 0x449   : > { %1298 = vmatpush.msra.mxu0 %v1975_v9 }
 0x44b   : > { %1299 = vmatpush.msra.mxu0 %v1976_v10 }
 0x44c   : > { %1799 = vmatmul.msk.f32.vlgmr.msra.gmra.mxu0 %vm942_vm4, %v1267_v7 }
 0x467   : > { %v1264_v11 = vpop.xlane.xlu2 %1263 }
 0x468   : > { %2013 = vrcp.f32 %v1264_v11 }
 0x46e   : > { %v2014_v12 = vpop.eup %2013 }
 0x46f   : > { %v1268_v13 = vmul.f32 %v2014_v12, %v2006_v54  ;;  %v2381_v54 = vmov 128.0  }
 0x470   : > { %2015 = vrcp.f32 %v2381_v54 }
 0x471   : > { %1798 = vst.msk [vmem:[%s2779_s18 + $0x38] sm:$0xff] %vm942_vm4, %v1268_v13  ;;  %1800 = vmatmul.msk.f32.gmra.mxu0 %vm942_vm4, %v1268_v13 }
 0x4a5   : > { %v1095_v14 = vpop.f32.mrf.mxu0 }
 0x4ad   : > { %v1098_v16 = vpop.f32.mrf.mxu0 }
 0x4b7   : > { %v1198_v15 = vpop.f32.mrf.mxu2 }
 0x4b8   : > { %1317 = vrot.lane.b32.xlu1 %v1198_v15, %s2377_s13 }
 0x4bf   : > { %v1201_v19 = vpop.f32.mrf.mxu2 }
 0x4c0   : > { %1309 = vrot.lane.b32.xlu1 %v1095_v14, %s2379_s12 }
 0x4c8   : > { %1311 = vrot.lane.b32.xlu1 %v1098_v16, %s2379_s12 }
 0x4c9   : > { %v1301_v18 = vpop.f32.mrf.mxu0 }
 0x4ca   : > { %1325 = vrot.lane.b32.xlu0 %v1301_v18, %s2378_s15 }
 0x4d0   : > { %1319 = vrot.lane.b32.xlu1 %v1201_v19, %s2377_s13  ;;  %v1981_v19 = vld [vmem:[%s2992_s9] ss:$0 sm:$0xff]  ;;  %s731_s13 = scalar_lea.vmem [#allocation18], %s2651_s0  ;;  %s1446_s0 = scalar_lea.sflag [#allocation6], %s2648_s11 }
 0x4d1   : > { %s1465_s12 = sshll.u32 %s731_s13, 4  ;;  %s1466_s12 = int_to_ptr.vmem [resolvable:$true] %s1465_s12 }
 0x4ee   : > { %v1304_v26 = vpop.f32.mrf.mxu0 }
 0x4ef   : > { %1327 = vrot.lane.b32.xlu2 %v1304_v26, %s2378_s15  ;;  %s1813_s15 = sshll.u32 %s2991_s29, 4 }
 0x4f0   : > { %s1464_s27 = scalar_lea.hbm %s2994_s25, %s1813_s15 }
 0x4f1   : > { %s1467_s20 = sshll.u32 %s1464_s27, 4  ;;  %s1468_s20 = int_to_ptr.hbm [resolvable:$true] %s1467_s20 }
 0x4f2   : > { %s2275_s14 = sshra.s32 %s1468_s20, 4  ;;  %s2276_s14 = int_to_ptr.hbm [resolvable:$true] %s2275_s14 }
 0x4f3   : > { %s2277_s16 = scalar_lea.hbm %s2276_s14, 16  ;;  %p2282_p8 = scmp.lt.s32.totalorder %s2276_s14, %s2994_s25 }
 0x4f4   : > { %p2278_p1 = scmp.ne.s32.totalorder %s2276_s14, %s2277_s16  ;;  %p2283_p10 = scmp.lt.s32.totalorder %s2281_s1, %s2277_s16 }
 0x4f6   : > { %p2279_p2 = pnand %p2278_p1, %p2560_p7  ;;  %p2284_p13 = por %p2283_p10, %p2282_p8 }
 0x4f8   : > { %p2280_p4 = pneg %p2279_p2 }
 0x4fa   : > { %p2285_p0 = pnand %p2284_p13, %p2280_p4 }
 0x52a   : > { %v1318_v34 = vpop.permute.xlu1 %1317 }
 0x532   : > { %v1310_v35 = vpop.permute.xlu1 %1309 }
 0x533   : > { %v1331_v36 = vsel %vm896_vm0, %v2797_v60, %v1310_v35 }
 0x534   : > { %v1334_v39 = vsel %vm1333_vm6, %v1331_v36, %v1318_v34 }
 0x53a   : > { %v1312_v37 = vpop.permute.xlu1 %1311 }
 0x53b   : > { %v1332_v42 = vsel %vm896_vm0, %v2799_v61, %v1312_v37  ;;  %v2016_v61 = vpop.eup %2015 }
 0x53c   : > { %v1326_v38 = vpop.permute.xlu0 %1325  ;;  %v1389_v55 = vmul.f32 128.0, %v2016_v61  ;;  %vm1393_vm8 = vweird.f32 %v2016_v61 }
 0x53d   : > { %v1337_v40 = vsel %vm1336_vm7, %v1334_v39, %v1326_v38 }
 0x53e   : > { %1375 = vmatmul.f32.vlgmr.msrb.gmra.mxu1 %v1337_v40  ;;  %v1390_v56 = vsub.f32 1.0, %v1389_v55 }
 0x540   : > { %v1391_v57 = vmul.f32 %v2016_v61, %v1390_v56 }
 0x542   : > { %v1320_v41 = vpop.permute.xlu1 %1319  ;;  %v1392_v58 = vadd.f32 %v2016_v61, %v1391_v57 }
 0x543   : > { %v1335_v44 = vsel %vm1333_vm6, %v1332_v42, %v1320_v41 }
 0x544   : > { %v1394_v59 = vsel %vm1393_vm8, %v2016_v61, %v1392_v58 }
 0x549   : > { %v1328_v45 = vpop.permute.xlu2 %1327 }
 0x54a   : > { %v1338_v46 = vsel %vm1336_vm7, %v1335_v44, %v1328_v45 }
 0x54b   : > { %1378 = vmatmul.f32.gmra.mxu1 %v1338_v46 }
 0x5bb   : > { %v1376_v60 = vpop.f32.mrf.mxu1 }
 0x5bc   : > { %v1377_v48 = vadd.f32 %v1980_v47, %v1376_v60 }
 0x5be   : > { %v1382_v50 = vadd.f32 %v1377_v48, %v2689_v43 }
 0x5c0   : > { %1384 = vadd.xlane.f32.xlu1 %v1382_v50 }
 0x5c8   : > { %v1379_v51 = vpop.f32.mrf.mxu1 }
 0x5c9   : > { %v1380_v52 = vadd.f32 %v1980_v47, %v1379_v51 }
 0x5cb   : > { %v1383_v53 = vadd.f32 %v1380_v52, %v2696_v49 }
 0x5cd   : > { %1386 = vadd.xlane.f32.xlu0 %v1383_v53 }
 0x633   : > { %v1385_v62 = vpop.xlane.xlu1 %1384 }
 0x634   : > { %v1395_v63 = vmul.f32 %v1394_v59, %v1385_v62 }
 0x636   : > { %v1397_v0 = vsub.f32 %v1382_v50, %v1395_v63 }
 0x638   : > { %v1399_v1 = vmul.f32 %v1397_v0, %v1397_v0 }
 0x63a   : > { %1401 = vadd.xlane.f32.xlu2 %v1399_v1 }
 0x640   : > { %v1387_v43 = vpop.xlane.xlu0 %1386 }
 0x641   : > { %v1396_v2 = vmul.f32 %v1394_v59, %v1387_v43 }
 0x643   : > { %v1398_v5 = vsub.f32 %v1383_v53, %v1396_v2 }
 0x645   : > { %v1400_v6 = vmul.f32 %v1398_v5, %v1398_v5 }
 0x647   : > { %1403 = vadd.xlane.f32.xlu1 %v1400_v6 }
 0x6ad   : > { %v1402_v49 = vpop.xlane.xlu2 %1401 }
 0x6ae   : > { %v1405_v7 = vmul.f32 %v1402_v49, %v1394_v59 }
 0x6b0   : > { %v1407_v8 = vadd.f32 1e-05, %v1405_v7 }
 0x6b2   : > { %2017 = vrsqrt.f32 %v1407_v8  ;;  %vm1415_vm10 = vweird.f32 %v1407_v8 }
 0x6b8   : > { %v2018_v9 = vpop.eup %2017 }
 0x6b9   : > { %v1410_v10 = vmul.f32 %v2018_v9, %v1407_v8  ;;  %vm1416_vm9 = vweird.f32 %v2018_v9 }
 0x6ba   : > { %v1404_v11 = vpop.xlane.xlu1 %1403  ;;  %vm1417_vm11 = vmor %vm1415_vm10, %vm1416_vm9 }
 0x6bb   : > { %v1411_v12 = vmul.f32 %v2018_v9, %v1410_v10  ;;  %v1406_v13 = vmul.f32 %v1404_v11, %v1394_v59 }
 0x6bd   : > { %v1412_v14 = vmul.f32 0.5, %v1411_v12  ;;  %v1408_v15 = vadd.f32 1e-05, %v1406_v13 }
 0x6bf   : > { %v1413_v16 = vsub.f32 1.5, %v1412_v14  ;;  %2019 = vrsqrt.f32 %v1408_v15  ;;  %vm1425_vm13 = vweird.f32 %v1408_v15 }
 0x6c1   : > { %v1414_v18 = vmul.f32 %v2018_v9, %v1413_v16 }
 0x6c3   : > { %v1418_v20 = vsel %vm1417_vm11, %v2018_v9, %v1414_v18 }
 0x6c4   : > { %v1429_v22 = vmul.f32 %v1418_v20, %v1397_v0 }
 0x6c5   : > { %v2020_v17 = vpop.eup %2019 }
 0x6c6   : > { %v1435_v23 = vmul.f32 %v1981_v19, %v1429_v22  ;;  %v1420_v25 = vmul.f32 %v2020_v17, %v1408_v15  ;;  %vm1426_vm12 = vweird.f32 %v2020_v17 }
 0x6c7   : > { %vm1427_vm14 = vmor %vm1425_vm13, %vm1426_vm12 }
 0x6c8   : > { %v1441_v26 = vadd.f32 %v1982_v21, %v1435_v23  ;;  %v1421_v27 = vmul.f32 %v2020_v17, %v1420_v25 }
 0x6ca   : > { %v1422_v24 = vmul.f32 0.5, %v1421_v27  ;;  %1443 = vst [vmem:[%s731_s13] sm:$0xff] %v1441_v26 }
 0x6cc   : > { %v1423_v28 = vsub.f32 1.5, %v1422_v24 }
 0x6ce   : > { %v1424_v29 = vmul.f32 %v2020_v17, %v1423_v28 }
 0x6d0   : > { %v1428_v30 = vsel %vm1427_vm14, %v2020_v17, %v1424_v29 }
 0x6d1   : > { %v1430_v31 = vmul.f32 %v1428_v30, %v1398_v5 }
 0x6d3   : > { %v1436_v32 = vmul.f32 %v1981_v19, %v1430_v31 }
 0x6d5   : > { %v1442_v33 = vadd.f32 %v1982_v21, %v1436_v32 }
 0x6d7   : > { %1444 = vst [vmem:[%s731_s13 + $0x8] sm:$0xff] %v1442_v33 }
 0x6d8   : > { %2288 = shalt.err (!%p2285_p0)
}
 0x6d9   : > { %s2382_s24 = smov 128   ;;  %s2383_s26 = smov 8  }
 0x6da   : > { %1839 = dma.vmem_to_hbm [thread:$0]  (%p2560_p7), %s1466_s12, 256, %s1468_s20, %s1446_s0, %s2382_s24, %s2382_s24, %s2383_s26  }
 0x6db   : > { %s1451_s13 = scalar_lea.sflag [#allocation20], %s2648_s11 }
 0x6dc   : > { %s2996_s27 = sld [smem:[#allocation47_spill]]  ;;  %s1494_s16 = sshll.u32 %s2779_s18, 4  ;;  %s1495_s16 = int_to_ptr.vmem [resolvable:$true] %s1494_s16 }
 0x6dd   : > { %s2384_s12 = smov 256   ;;  %s2385_s11 = smov 512  }
 0x6de   : > { %1840 = sst [smem:[#allocation22]] (%p2560_p7), %s2384_s12  ;;  %s2386_s29 = smov 2  }
 0x6df   : > { %1841 = sst [smem:[#allocation22 + $0x1]] (%p2560_p7), %s2385_s11  ;;  %s2387_s20 = smov 128  }
 0x6e0   : > { %1842 = sst [smem:[#allocation22 + $0x2]] (%p2560_p7), %s2386_s29  ;;  %s2389_s18 = smov [#allocation21]  }
 0x6e1   : > { %1843 = sst [smem:[#allocation22 + $0x3]] (%p2560_p7), %s2387_s20  ;;  %s2390_s0 = smov 0  }
 0x6e2   : > { %s1483_s14 = scalar_lea.hbm %s2996_s27, %s1813_s15  ;;  %1844 = sst [smem:[#allocation22 + $0x4]] (%p2560_p7), %s2387_s20 }
 0x6e3   : > { %s1496_s17 = sshll.u32 %s1483_s14, 4  ;;  %s2388_s15 = smov 8   ;;  %s1497_s17 = int_to_ptr.hbm [resolvable:$true] %s1496_s17 }
 0x6e4   : > { %1845 = sst [smem:[#allocation22 + $0x5]] (%p2560_p7), %s2388_s15 }
 0x6e5   : > { %1846 = dma.general (%p2560_p7), %s1495_s16, 1024, %s1497_s17, %s1451_s13, %s2389_s18, [#allocation22], %s2390_s0, 0  }
 0x6e6 PF: > { %s2997_s21 = sld [smem:[#allocation31_spill]]  ;;  %p1876_p3 = pnand %p1747_p11, %p2516_p6 }
 0x6e8   : > { %p1877_p5 = pneg %p1876_p3 }
 0x6ec   : > { %s1524_s9 = sand.u32 1, %s2997_s21  }
 0x6ed   : > { %s1525_s4 = scalar_lea.sflag [#allocation6], %s1524_s9 }
 0x6ee   : > { %2338 = dma.done.wait (%p1877_p5), %s1525_s4, 256  }
 0x6ef   : > { %2340 = vsyncadd (%p1877_p5), %s1525_s4, 4294967040  ;;  %s1535_s24 = scalar_lea.sflag [#allocation20], %s1524_s9 }
 0x6f0   : > { %2342 = dma.done.wait (%p1877_p5), %s1535_s24, 1024  }
 0x6f1   : > { %2344 = vsyncadd (%p1877_p5), %s1535_s24, 4294966272  ;;  %s43_s23 = sadd.s32 1, %s2367_s23   ;;  %s2999_s6 = sld [smem:[#allocation32_spill]] }
 0x6f2   : > { %p40_p9 = scmp.ge.s32.totalorder %s43_s23, 4   ;;  %s3000_s20 = sld [smem:[#allocation37_spill]] }
 0x6f3   : > { %s3001_s26 = sld [smem:[#allocation35_spill]]  ;;  %s3002_s18 = smov %s2351_s19 }
 0x6f4   : > { %s3004_s21 = smov %s2363_s22 }
 0x6f5   :  { %42 = sbr.rel (!%p40_p9) target bundleno = 25 (0x19), region = 203 }
 0x6f7   : > { %s3003_s19 = smov %s2999_s6 }
 0x6f9   : > { %s3005_s22 = smov %s3001_s26 }
 0x6fa   :  { %1541 = vsyncpa [#allocation5], 1 }
 0x6fb   :  { %1543 = vsyncpa [#allocation5 + $0x1], 1 }
 0x6fc   :  { %1544 = vsyncpa [#allocation8], 1 }
 0x6fd   :  { %1546 = vsyncpa [#allocation8 + $0x1], 1 }
 0x6fe   :  { %1547 = vsyncpa [#allocation11], 1 }
 0x6ff   :  { %1549 = vsyncpa [#allocation11 + $0x1], 1 }
 0x700   :  { %1550 = vsyncpa [#allocation14], 1 }
 0x701   :  { %1551 = vsyncpa [#allocation17], 1 }
 0x702   :  { %1552 = vsyncpa [#allocation6], 1 }
 0x703   :  { %1554 = vsyncpa [#allocation6 + $0x1], 1 }
 0x704   :  { %1555 = vsyncpa [#allocation20], 1 }
 0x705   :  { %1557 = vsyncpa [#allocation20 + $0x1], 1 }

</bundles_post_ra>
